<compile_context>
chip_gen: v7x
topology: tpu7x:2x2x1
jax: 0.10.0
libtpu: 0.0.40
codegen_flags: <defaults>
</compile_context>

<pallas_src>
import jax
import jax.numpy as jnp
from jax.experimental import pallas as pl
from jax.experimental.pallas import tpu as pltpu


def _cdiv(a, b):
    return -(-a // b)


def _round_up(a, m):
    return _cdiv(a, m) * m


def _leaky_relu(h, slope=0.2):
    # max(h, slope*h) == leaky_relu(h, slope) for 0 < slope < 1
    return jnp.maximum(h, slope * h)


def generator_kernel(xz_ref, w1_ref, b1_ref, w2_ref, b2_ref,
                     w3_ref, b3_ref, w4_ref, b4_ref, o_ref):
    # fc1 + leaky_relu(0.2)   (x,z pre-concatenated into one bf16 tile)
    h = jnp.dot(xz_ref[...], w1_ref[...],
                preferred_element_type=jnp.float32) + b1_ref[...]
    h = _leaky_relu(h)
    # fc2 + leaky_relu(0.2)
    h = jnp.dot(h.astype(jnp.bfloat16), w2_ref[...],
                preferred_element_type=jnp.float32) + b2_ref[...]
    h = _leaky_relu(h)
    # fc3 + leaky_relu(0.2)
    h = jnp.dot(h.astype(jnp.bfloat16), w3_ref[...],
                preferred_element_type=jnp.float32) + b3_ref[...]
    h = _leaky_relu(h)
    # fc4 + tanh
    h = jnp.dot(h.astype(jnp.bfloat16), w4_ref[...],
                preferred_element_type=jnp.float32) + b4_ref[...]
    o_ref[...] = jnp.tanh(h).astype(o_ref.dtype)


def prepare_generator_params(params):
    """One-time model prep, OUTSIDE the per-call traced path:
       * cast all weights to bf16 (halves the dominant weight HBM traffic),
       * pad fc4's output columns (and b4) up to a multiple of 128 so the
         kernel's output stores are lane-dense.
       Returns (prepped_tuple, input_dim)."""
    (w1, b1), (w2, b2), (w3, b3), (w4, b4) = params
    input_dim = w4.shape[1]
    d_pad = _round_up(input_dim, 128)
    if d_pad != input_dim:
        w4 = jnp.pad(w4, ((0, 0), (0, d_pad - input_dim)))
        b4 = jnp.pad(b4, ((0, 0), (0, d_pad - input_dim)))
    prepped = (w1.astype(jnp.bfloat16), b1.astype(jnp.float32),
               w2.astype(jnp.bfloat16), b2.astype(jnp.float32),
               w3.astype(jnp.bfloat16), b3.astype(jnp.float32),
               w4.astype(jnp.bfloat16), b4.astype(jnp.float32))
    return prepped, input_dim


def _pick_batch_tile(B, tm_max):
    """Balanced batch tiling:
       * steps = cdiv(B, tm_max); tm = round_up(cdiv(B, steps), 8)
       * at least 2 grid steps when B permits (v7x has 2 TensorCores/chip)
       * snap tm to the 128 MXU edge only if it adds no extra padding rows."""
    steps = _cdiv(B, tm_max)
    if steps < 2 and B > 8:
        steps = 2
    tm = _round_up(_cdiv(B, steps), 8)
    if tm >= 128:
        tm128 = _round_up(tm, 128)
        if _round_up(B, tm128) <= _round_up(B, tm):
            tm = tm128
    b_pad = _round_up(B, tm)
    return tm, b_pad


def generator_forward(x, z, prepped, input_dim, *, tm_max=512):
    """x: (B, dx) f32, z: (B, dz) f32; returns (B, input_dim) f32."""
    w1, b1, w2, b2, w3, b3, w4, b4 = prepped
    B = x.shape[0]
    latent = w1.shape[0]
    h1, h2, h3, d_pad = w1.shape[1], w2.shape[1], w3.shape[1], w4.shape[1]
    assert x.shape[1] + z.shape[1] == latent

    # Fused fc1 operand: one (B, latent) bf16 tile (tiny XLA-side concat/cast).
    xz = jnp.concatenate([x, z], axis=1).astype(jnp.bfloat16)

    tm, b_pad = _pick_batch_tile(B, tm_max)
    if b_pad != B:
        xz = jnp.pad(xz, ((0, b_pad - B), (0, 0)))
    grid = (b_pad // tm,)

    tiled = lambda d: pl.BlockSpec((tm, d), lambda i: (i, 0))     # batch-tiled
    fixed = lambda r, c: pl.BlockSpec((r, c), lambda i: (0, 0))   # VMEM-resident

    flops = 2 * b_pad * (latent * h1 + h1 * h2 + h2 * h3 + h3 * d_pad)
    bytes_accessed = (
        (w1.size + w2.size + w3.size + w4.size) * 2     # bf16 weights
        + (b1.size + b2.size + b3.size + b4.size) * 4   # f32 biases
        + xz.size * 2                                   # bf16 input
        + b_pad * d_pad * 4)                            # f32 output
    cost = pl.CostEstimate(flops=flops,
                           transcendentals=b_pad * d_pad,
                           bytes_accessed=bytes_accessed)

    out = pl.pallas_call(
        generator_kernel,
        out_shape=jax.ShapeDtypeStruct((b_pad, d_pad), jnp.float32),
        grid=grid,
        in_specs=[
            tiled(latent),
            fixed(latent, h1), fixed(1, h1),
            fixed(h1, h2), fixed(1, h2),
            fixed(h2, h3), fixed(1, h3),
            fixed(h3, d_pad), fixed(1, d_pad),
        ],
        out_specs=tiled(d_pad),
        compiler_params=pltpu.CompilerParams(
            dimension_semantics=("parallel",)),
        cost_estimate=cost,
    )(xz, w1, b1, w2, b2, w3, b3, w4, b4)

    return out[:B, :input_dim]


def init_params(key, latent_dim, input_dim):
    """Deterministic PyTorch-Linear-style init; weights stored as (in, out)."""
    dims = [(latent_dim, 256), (256, 512), (512, 1024), (1024, input_dim)]
    params = []
    for fan_in, fan_out in dims:
        key, kw, kb = jax.random.split(key, 3)
        bound = 1.0 / jnp.sqrt(float(fan_in))
        w = jax.random.uniform(kw, (fan_in, fan_out), jnp.float32, -bound, bound)
        b = jax.random.uniform(kb, (1, fan_out), jnp.float32, -bound, bound)
        params.append((w, b))
    return params


def _reference(x, z, params):
    """Pure-JAX f32 reference of the PyTorch forward."""
    h = jnp.concatenate([x, z], axis=1)
    (w1, b1), (w2, b2), (w3, b3), (w4, b4) = params
    h = _leaky_relu(h @ w1 + b1)
    h = _leaky_relu(h @ w2 + b2)
    h = _leaky_relu(h @ w3 + b3)
    return jnp.tanh(h @ w4 + b4)


if __name__ == "__main__":
    key = jax.random.PRNGKey(0)
    kx, kz, kp = jax.random.split(key, 3)

    B = 8                        # batch
    dx, dz = 16, 16              # noise + latent code -> latent_dim = 32
    latent_dim = dx + dz
    input_dim = 100              # non-multiple of 128 -> exercises lane-padding path

    x = jax.random.normal(kx, (B, dx), jnp.float32)
    z = jax.random.normal(kz, (B, dz), jnp.float32)
    params = init_params(kp, latent_dim, input_dim)

    prepped, d_out = prepare_generator_params(params)   # one-time, outside hot path
    out = generator_forward(x, z, prepped, d_out)
    out = jax.block_until_ready(out)

    assert out.shape == (B, input_dim)
    assert bool(jnp.all(jnp.isfinite(out)))
    ref = _reference(x, z, params)
    # bf16 weights/activations in the kernel vs f32 reference -> loose tolerance
    assert bool(jnp.allclose(out, ref, atol=5e-2, rtol=5e-2)), \
        float(jnp.max(jnp.abs(out - ref)))
    print("KERNEL_OK")
</pallas_src>

<mosaic_0001>
module attributes {stable_mosaic.version = 11 : i64} {
  func.func @generator_kernel(%arg0: i32, %arg1: memref<8x32xbf16, #tpu.memory_space<vmem>>, %arg2: memref<32x256xbf16, #tpu.memory_space<vmem>>, %arg3: memref<1x256xf32, #tpu.memory_space<vmem>>, %arg4: memref<256x512xbf16, #tpu.memory_space<vmem>>, %arg5: memref<1x512xf32, #tpu.memory_space<vmem>>, %arg6: memref<512x1024xbf16, #tpu.memory_space<vmem>>, %arg7: memref<1x1024xf32, #tpu.memory_space<vmem>>, %arg8: memref<1024x128xbf16, #tpu.memory_space<vmem>>, %arg9: memref<1x128xf32, #tpu.memory_space<vmem>>, %arg10: memref<8x128xf32, #tpu.memory_space<vmem>>) attributes {dimension_semantics = [#tpu.dimension_semantics<parallel>], iteration_bounds = array<i64: 1>, scalar_prefetch = 0 : i64, scratch_operands = 0 : i64, tpu.core_type = #tpu.core_type<tc>, window_params = [{transform_indices = @transform_0, window_bounds = array<i64: 8, 32>}, {pipeline_mode = #tpu.pipeline_mode<synchronous>, transform_indices = @transform_1, window_bounds = array<i64: 32, 256>}, {pipeline_mode = #tpu.pipeline_mode<synchronous>, transform_indices = @transform_2, window_bounds = array<i64: 1, 256>}, {pipeline_mode = #tpu.pipeline_mode<synchronous>, transform_indices = @transform_3, window_bounds = array<i64: 256, 512>}, {pipeline_mode = #tpu.pipeline_mode<synchronous>, transform_indices = @transform_4, window_bounds = array<i64: 1, 512>}, {pipeline_mode = #tpu.pipeline_mode<synchronous>, transform_indices = @transform_5, window_bounds = array<i64: 512, 1024>}, {pipeline_mode = #tpu.pipeline_mode<synchronous>, transform_indices = @transform_6, window_bounds = array<i64: 1, 1024>}, {pipeline_mode = #tpu.pipeline_mode<synchronous>, transform_indices = @transform_7, window_bounds = array<i64: 1024, 128>}, {pipeline_mode = #tpu.pipeline_mode<synchronous>, transform_indices = @transform_8, window_bounds = array<i64: 1, 128>}, {transform_indices = @transform_9, window_bounds = array<i64: 8, 128>}]} {
    %c0 = arith.constant 0 : index
    %c0_0 = arith.constant 0 : index
    %0 = vector.load %arg1[%c0, %c0_0] : memref<8x32xbf16, #tpu.memory_space<vmem>>, vector<8x32xbf16>
    %c0_1 = arith.constant 0 : index
    %c0_2 = arith.constant 0 : index
    %1 = vector.load %arg2[%c0_1, %c0_2] : memref<32x256xbf16, #tpu.memory_space<vmem>>, vector<32x256xbf16>
    %cst = arith.constant dense<0.000000e+00> : vector<8x256xf32>
    %2 = tpu.matmul %0, %1, %cst {dimension_numbers = #tpu.dot_dimension_numbers<[1], [0], [0], [1], [0, 0, 1, 1], [], []>} : vector<8x32xbf16>, vector<32x256xbf16>, vector<8x256xf32> -> vector<8x256xf32>
    %c0_3 = arith.constant 0 : index
    %c0_4 = arith.constant 0 : index
    %3 = vector.load %arg3[%c0_3, %c0_4] : memref<1x256xf32, #tpu.memory_space<vmem>>, vector<1x256xf32>
    %4 = vector.broadcast %3 : vector<1x256xf32> to vector<8x256xf32>
    %5 = arith.addf %2, %4 : vector<8x256xf32>
    %cst_5 = arith.constant 2.000000e-01 : f32
    %6 = vector.broadcast %cst_5 : f32 to vector<8x256xf32>
    %7 = arith.mulf %6, %5 : vector<8x256xf32>
    %8 = arith.maximumf %5, %7 : vector<8x256xf32>
    %9 = arith.truncf %8 : vector<8x256xf32> to vector<8x256xbf16>
    %c0_6 = arith.constant 0 : index
    %c0_7 = arith.constant 0 : index
    %10 = vector.load %arg4[%c0_6, %c0_7] : memref<256x512xbf16, #tpu.memory_space<vmem>>, vector<256x512xbf16>
    %cst_8 = arith.constant dense<0.000000e+00> : vector<8x512xf32>
    %11 = tpu.matmul %9, %10, %cst_8 {dimension_numbers = #tpu.dot_dimension_numbers<[1], [0], [0], [1], [0, 0, 1, 1], [], []>} : vector<8x256xbf16>, vector<256x512xbf16>, vector<8x512xf32> -> vector<8x512xf32>
    %c0_9 = arith.constant 0 : index
    %c0_10 = arith.constant 0 : index
    %12 = vector.load %arg5[%c0_9, %c0_10] : memref<1x512xf32, #tpu.memory_space<vmem>>, vector<1x512xf32>
    %13 = vector.broadcast %12 : vector<1x512xf32> to vector<8x512xf32>
    %14 = arith.addf %11, %13 : vector<8x512xf32>
    %cst_11 = arith.constant 2.000000e-01 : f32
    %15 = vector.broadcast %cst_11 : f32 to vector<8x512xf32>
    %16 = arith.mulf %15, %14 : vector<8x512xf32>
    %17 = arith.maximumf %14, %16 : vector<8x512xf32>
    %18 = arith.truncf %17 : vector<8x512xf32> to vector<8x512xbf16>
    %c0_12 = arith.constant 0 : index
    %c0_13 = arith.constant 0 : index
    %19 = vector.load %arg6[%c0_12, %c0_13] : memref<512x1024xbf16, #tpu.memory_space<vmem>>, vector<512x1024xbf16>
    %cst_14 = arith.constant dense<0.000000e+00> : vector<8x1024xf32>
    %20 = tpu.matmul %18, %19, %cst_14 {dimension_numbers = #tpu.dot_dimension_numbers<[1], [0], [0], [1], [0, 0, 1, 1], [], []>} : vector<8x512xbf16>, vector<512x1024xbf16>, vector<8x1024xf32> -> vector<8x1024xf32>
    %c0_15 = arith.constant 0 : index
    %c0_16 = arith.constant 0 : index
    %21 = vector.load %arg7[%c0_15, %c0_16] : memref<1x1024xf32, #tpu.memory_space<vmem>>, vector<1x1024xf32>
    %22 = vector.broadcast %21 : vector<1x1024xf32> to vector<8x1024xf32>
    %23 = arith.addf %20, %22 : vector<8x1024xf32>
    %cst_17 = arith.constant 2.000000e-01 : f32
    %24 = vector.broadcast %cst_17 : f32 to vector<8x1024xf32>
    %25 = arith.mulf %24, %23 : vector<8x1024xf32>
    %26 = arith.maximumf %23, %25 : vector<8x1024xf32>
    %27 = arith.truncf %26 : vector<8x1024xf32> to vector<8x1024xbf16>
    %c0_18 = arith.constant 0 : index
    %c0_19 = arith.constant 0 : index
    %28 = vector.load %arg8[%c0_18, %c0_19] : memref<1024x128xbf16, #tpu.memory_space<vmem>>, vector<1024x128xbf16>
    %cst_20 = arith.constant dense<0.000000e+00> : vector<8x128xf32>
    %29 = tpu.matmul %27, %28, %cst_20 {dimension_numbers = #tpu.dot_dimension_numbers<[1], [0], [0], [1], [0, 0, 1, 1], [], []>} : vector<8x1024xbf16>, vector<1024x128xbf16>, vector<8x128xf32> -> vector<8x128xf32>
    %c0_21 = arith.constant 0 : index
    %c0_22 = arith.constant 0 : index
    %30 = vector.load %arg9[%c0_21, %c0_22] : memref<1x128xf32, #tpu.memory_space<vmem>>, vector<1x128xf32>
    %31 = vector.broadcast %30 : vector<1x128xf32> to vector<8x128xf32>
    %32 = arith.addf %29, %31 : vector<8x128xf32>
    %33 = math.tanh %32 : vector<8x128xf32>
    %c0_23 = arith.constant 0 : index
    %c0_24 = arith.constant 0 : index
    %34 = vector.load %arg10[%c0_23, %c0_24] : memref<8x128xf32, #tpu.memory_space<vmem>>, vector<8x128xf32>
    tpu.vector_store %arg10[%c0_23, %c0_24], %33 {strides = array<i32>} : memref<8x128xf32, #tpu.memory_space<vmem>>, vector<8x128xf32>,
    return
  }
  func.func @transform_0(%arg0: i32) -> (i32, i32) {
    %c0_i32 = arith.constant 0 : i32
    %c0_i32_0 = arith.constant 0 : i32
    return %arg0, %c0_i32 : i32, i32
  }
  func.func @transform_1(%arg0: i32) -> (i32, i32) {
    %c0_i32 = arith.constant 0 : i32
    %c0_i32_0 = arith.constant 0 : i32
    %c0_i32_1 = arith.constant 0 : i32
    return %c0_i32, %c0_i32_0 : i32, i32
  }
  func.func @transform_2(%arg0: i32) -> (i32, i32) {
    %c0_i32 = arith.constant 0 : i32
    %c0_i32_0 = arith.constant 0 : i32
    %c0_i32_1 = arith.constant 0 : i32
    return %c0_i32, %c0_i32_0 : i32, i32
  }
  func.func @transform_3(%arg0: i32) -> (i32, i32) {
    %c0_i32 = arith.constant 0 : i32
    %c0_i32_0 = arith.constant 0 : i32
    %c0_i32_1 = arith.constant 0 : i32
    return %c0_i32, %c0_i32_0 : i32, i32
  }
  func.func @transform_4(%arg0: i32) -> (i32, i32) {
    %c0_i32 = arith.constant 0 : i32
    %c0_i32_0 = arith.constant 0 : i32
    %c0_i32_1 = arith.constant 0 : i32
    return %c0_i32, %c0_i32_0 : i32, i32
  }
  func.func @transform_5(%arg0: i32) -> (i32, i32) {
    %c0_i32 = arith.constant 0 : i32
    %c0_i32_0 = arith.constant 0 : i32
    %c0_i32_1 = arith.constant 0 : i32
    return %c0_i32, %c0_i32_0 : i32, i32
  }
  func.func @transform_6(%arg0: i32) -> (i32, i32) {
    %c0_i32 = arith.constant 0 : i32
    %c0_i32_0 = arith.constant 0 : i32
    %c0_i32_1 = arith.constant 0 : i32
    return %c0_i32, %c0_i32_0 : i32, i32
  }
  func.func @transform_7(%arg0: i32) -> (i32, i32) {
    %c0_i32 = arith.constant 0 : i32
    %c0_i32_0 = arith.constant 0 : i32
    %c0_i32_1 = arith.constant 0 : i32
    return %c0_i32, %c0_i32_0 : i32, i32
  }
  func.func @transform_8(%arg0: i32) -> (i32, i32) {
    %c0_i32 = arith.constant 0 : i32
    %c0_i32_0 = arith.constant 0 : i32
    %c0_i32_1 = arith.constant 0 : i32
    return %c0_i32, %c0_i32_0 : i32, i32
  }
  func.func @transform_9(%arg0: i32) -> (i32, i32) {
    %c0_i32 = arith.constant 0 : i32
    %c0_i32_0 = arith.constant 0 : i32
    return %arg0, %c0_i32 : i32, i32
  }
}

</mosaic_0001>

<bundles_post_ra>
// kernel: tpu_custom_call.1
= control target key start
LH: loop header
LB: loop body
LE: loop exit
PB: predicated region body
PF: predicated region fallthrough
CT: control target
= control target key end

     0   :  { %14 = vsyncpa [#allocation3], 0  ;;  %s4368_s0 = inlined_call_operand.hbm [shape: bf16[8,32], index: 0, kind: input, shape index: {}]   ;;  %s4369_s1 = inlined_call_operand.hbm [shape: bf16[32,256], index: 1, kind: input, shape index: {}]   ;;  %s4370_s2 = inlined_call_operand.vmem [shape: f32[1,256], index: 2, kind: input, shape index: {}]   ;;  %s4371_s3 = inlined_call_operand.hbm [shape: bf16[256,512], index: 3, kind: input, shape index: {}]   ;;  %s4372_s4 = inlined_call_operand.vmem [shape: f32[1,512], index: 4, kind: input, shape index: {}]   ;;  %s4373_s5 = inlined_call_operand.hbm [shape: bf16[512,1024], index: 5, kind: input, shape index: {}]   ;;  %s4374_s6 = inlined_call_operand.vmem [shape: f32[1,1024], index: 6, kind: input, shape index: {}]   ;;  %s4375_s7 = inlined_call_operand.hbm [shape: bf16[1024,128], index: 7, kind: input, shape index: {}]   ;;  %s4376_s8 = inlined_call_operand.vmem [shape: f32[1,128], index: 8, kind: input, shape index: {}]   ;;  %s4377_s9 = inlined_call_operand.hbm [shape: f32[8,128], index: 9, kind: output, shape index: {}]  }
   0x1   :  { %15 = vsyncpa [#allocation6], 0 }
   0x2   :  { %16 = vsyncpa [#allocation9], 0 }
   0x3   :  { %17 = vsyncpa [#allocation4], 0  ;;  %s4141_s30 = smov [#allocation5]   ;;  %s4001_s13 = scalar_lea.hbm %s4369_s1, 512 }
   0x4   :  { %s33_s10 = sshll.u32 %s4141_s30, 4  ;;  %p4002_p0 = scmp.ne.s32.totalorder %s4369_s1, %s4001_s13  ;;  %s34_s10 = int_to_ptr.vmem [resolvable:$true] %s33_s10 }
   0x5   :  { %p4005_p1 = scmp.lt.u32.totalorder %s4001_s13, %s4369_s1 }
   0x7   :  { %p4007_p2 = pnand %p4005_p1, %p4002_p0 }
   0x9   :  { %4010 = shalt.err (!%p4007_p2)
}
   0xa   :  { %s4011_s18 = scalar_lea.vmem %s34_s10, 512  ;;  %p4016_p4 = scmp.lt.s32.totalorder %s34_s10, %s34_s10 }
   0xb   :  { %p4012_p3 = scmp.ne.s32.totalorder %s34_s10, %s4011_s18  ;;  %p4017_p5 = scmp.lt.s32.totalorder %s4011_s18, %s4011_s18 }
   0xd   :  { %p4018_p6 = por %p4017_p5, %p4016_p4 }
   0xf   :  { %p4019_p7 = pnand %p4018_p6, %p4012_p3 }
  0x11   :  { %4022 = shalt.err (!%p4019_p7)
}
  0x12   :  { %s4142_s19 = smov 128   ;;  %s4143_s20 = smov 8  }
  0x13   :  { %39 = dma.hbm_to_vmem [thread:$0]  %s4369_s1, 512, %s34_s10, [#allocation6], %s4142_s19, %s4142_s19, %s4143_s20  }
  0x14   :  { %s4144_s23 = smov [#allocation8]   ;;  %s4023_s27 = scalar_lea.hbm %s4373_s5, 32768 }
  0x15   :  { %s61_s24 = sshll.u32 %s4144_s23, 4  ;;  %p4024_p8 = scmp.ne.s32.totalorder %s4373_s5, %s4023_s27  ;;  %s62_s24 = int_to_ptr.vmem [resolvable:$true] %s61_s24 }
  0x16   :  { %p4027_p9 = scmp.lt.u32.totalorder %s4023_s27, %s4373_s5 }
  0x18   :  { %p4029_p10 = pnand %p4027_p9, %p4024_p8 }
  0x1a   :  { %4032 = shalt.err (!%p4029_p10)
}
  0x1b   :  { %s4033_s12 = scalar_lea.vmem %s62_s24, 32768  ;;  %p4038_p12 = scmp.lt.s32.totalorder %s62_s24, %s62_s24 }
  0x1c   :  { %p4034_p11 = scmp.ne.s32.totalorder %s62_s24, %s4033_s12  ;;  %p4039_p13 = scmp.lt.s32.totalorder %s4033_s12, %s4033_s12 }
  0x1e   :  { %p4040_p0 = por %p4039_p13, %p4038_p12 }
  0x20   :  { %p4041_p1 = pnand %p4040_p0, %p4034_p11 }
  0x22   :  { %4044 = shalt.err (!%p4041_p1)
}
  0x23   :  { %s4145_s1 = smov 512   ;;  %s4146_s10 = smov 32  }
  0x24   :  { %67 = dma.hbm_to_vmem [thread:$0]  %s4373_s5, 32768, %s62_s24, [#allocation9], %s4145_s1, %s4145_s1, %s4146_s10  }
  0x25   :  { %s4147_s15 = smov [#allocation2]   ;;  %s4148_s17 = smov [#allocation7]  }
  0x26   :  { %s24_s16 = sshll.u32 %s4147_s15, 4  ;;  %s47_s18 = sshll.u32 %s4148_s17, 4  ;;  %s25_s16 = int_to_ptr.vmem [resolvable:$true] %s24_s16  ;;  %s4230_s18 = int_to_ptr.vmem [resolvable:$true] %s47_s18 }
  0x27   :  { %s4045_s21 = scalar_lea.hbm %s4368_s0, 64 }
  0x28   :  { %p4046_p2 = scmp.ne.s32.totalorder %s4368_s0, %s4045_s21  ;;  %p4049_p3 = scmp.lt.u32.totalorder %s4045_s21, %s4368_s0 }
  0x2a   :  { %p4051_p4 = pnand %p4049_p3, %p4046_p2 }
  0x2c   :  { %4054 = shalt.err (!%p4051_p4)
}
  0x2d   :  { %s4055_s5 = scalar_lea.vmem %s25_s16, 64  ;;  %p4060_p6 = scmp.lt.s32.totalorder %s25_s16, %s25_s16 }
  0x2e   :  { %p4056_p5 = scmp.ne.s32.totalorder %s25_s16, %s4055_s5  ;;  %p4061_p7 = scmp.lt.s32.totalorder %s4055_s5, %s4055_s5 }
  0x30   :  { %p4062_p8 = por %p4061_p7, %p4060_p6 }
  0x32   :  { %p4063_p9 = pnand %p4062_p8, %p4056_p5 }
  0x34   :  { %4066 = shalt.err (!%p4063_p9)
}
  0x35   :  { %27 = dma.hbm_to_vmem [thread:$0]  %s4368_s0, 64, %s25_s16, [#allocation3]  }
  0x36   :  { %s4067_s30 = scalar_lea.hbm %s4371_s3, 8192 }
  0x37   :  { %p4068_p10 = scmp.ne.s32.totalorder %s4371_s3, %s4067_s30  ;;  %p4071_p11 = scmp.lt.u32.totalorder %s4067_s30, %s4371_s3 }
  0x39   :  { %p4073_p12 = pnand %p4071_p11, %p4068_p10 }
  0x3b   :  { %4076 = shalt.err (!%p4073_p12)
}
  0x3c   :  { %s4077_s13 = scalar_lea.vmem %s4230_s18, 8192  ;;  %p4082_p0 = scmp.lt.s32.totalorder %s4230_s18, %s4230_s18 }
  0x3d   :  { %p4078_p13 = scmp.ne.s32.totalorder %s4230_s18, %s4077_s13  ;;  %p4083_p1 = scmp.lt.s32.totalorder %s4077_s13, %s4077_s13 }
  0x3f   :  { %p4084_p2 = por %p4083_p1, %p4082_p0 }
  0x41   :  { %p4085_p3 = pnand %p4084_p2, %p4078_p13 }
  0x43   :  { %4088 = shalt.err (!%p4085_p3)
}
  0x44   :  { %s4149_s0 = smov 256   ;;  %s4150_s14 = smov 16  }
  0x45   :  { %53 = dma.hbm_to_vmem [thread:$0]  %s4371_s3, 8192, %s4230_s18, [#allocation6], %s4149_s0, %s4149_s0, %s4150_s14  }
  0x46   :  { %s4151_s17 = smov [#allocation10]   ;;  %s4089_s22 = scalar_lea.hbm %s4375_s7, 8192 }
  0x47   :  { %s75_s19 = sshll.u32 %s4151_s17, 4  ;;  %p4090_p4 = scmp.ne.s32.totalorder %s4375_s7, %s4089_s22  ;;  %s76_s19 = int_to_ptr.vmem [resolvable:$true] %s75_s19 }
  0x48   :  { %p4093_p5 = scmp.lt.u32.totalorder %s4089_s22, %s4375_s7 }
  0x4a   :  { %p4095_p6 = pnand %p4093_p5, %p4090_p4 }
  0x4c   :  { %4098 = shalt.err (!%p4095_p6)
}
  0x4d   :  { %s4099_s24 = scalar_lea.vmem %s76_s19, 8192  ;;  %p4104_p8 = scmp.lt.s32.totalorder %s76_s19, %s76_s19 }
  0x4e   :  { %p4100_p7 = scmp.ne.s32.totalorder %s76_s19, %s4099_s24  ;;  %p4105_p9 = scmp.lt.s32.totalorder %s4099_s24, %s4099_s24 }
  0x50   :  { %p4106_p10 = por %p4105_p9, %p4104_p8 }
  0x52   :  { %p4107_p11 = pnand %p4106_p10, %p4100_p7 }
  0x54   :  { %4110 = shalt.err (!%p4107_p11)
}
  0x55   :  { %s4152_s3 = smov 64   ;;  %s4153_s18 = smov 4  }
  0x56   :  { %81 = dma.hbm_to_vmem [thread:$0]  %s4375_s7, 8192, %s76_s19, [#allocation9], %s4152_s3, %s4152_s3, %s4153_s18  }
  0x57   :  { %4133 = dma.done.wait [#allocation3], 64  }
  0x58   :  { %4134 = vsyncadd [#allocation3], 4294967232 }
  0x59   :  { %4135 = dma.done.wait [#allocation6], 8704  }
  0x5a   :  { %4136 = vsyncadd [#allocation6], 4294958592 }
  0x5b   :  { %4137 = dma.done.wait [#allocation9], 40960  }
  0x5c   :  { %4138 = vsyncadd [#allocation9], 4294926336  ;;  %v4154_v0 = vmov 0   ;;  %v3833_v1 = vld [vmem:[#allocation5 + $0x4] ss:$8 sps:$4 sm:$0xff]   ;;  %vm137_vm0 = vcmask 261120  }
  0x5d   :  { %173 = vmatprep.mubr.bf16.mxu0 %v4154_v0  ;;  %v3835_v2 = vld [vmem:[#allocation5] ss:$8 sps:$4 sm:$0xff]   ;;  %141 = vmatprep.subr.bf16.mxu0 %v3833_v1  ;;  %v3836_v3 = vld [vmem:[#allocation5 + $0x14] ss:$8 sps:$4 sm:$0xff]   ;;  %v3838_v4 = vld [vmem:[#allocation5 + $0x10] ss:$8 sps:$4 sm:$0xff]  }
  0x5e   :  { %142 = vmatpush1.bf16.msra.mxu0 %v3835_v2  ;;  %v3839_v5 = vld [vmem:[#allocation7 + $0x4] ss:$16 sps:$4 sm:$0xff]   ;;  %v100_v6 = vld [vmem:[#allocation2] sm:$0xf]  ;;  %v3844_v8 = vld [vmem:[#allocation7] ss:$16 sps:$4 sm:$0xff]  }
  0x5f   :  { %143 = vmatprep.subr.bf16.mxu0 %v3836_v3  ;;  %594 = vmatprep.subr.bf16.mxu1 %v3839_v5  ;;  %v3843_v7 = vld [vmem:[#allocation7 + $0xc] ss:$16 sps:$4 sm:$0xff]   ;;  %v3845_v9 = vld [vmem:[#allocation7 + $0x24] ss:$16 sps:$4 sm:$0xff]   ;;  %v3841_v10 = vld [vmem:[#allocation7 + $0x8] ss:$16 sps:$4 sm:$0xff]  }
  0x60   :  { %595 = vmatpush1.bf16.msra.mxu1 %v3844_v8  ;;  %v3849_v11 = vld [vmem:[#allocation7 + $0x2c] ss:$16 sps:$4 sm:$0xff]   ;;  %v3850_v12 = vld [vmem:[#allocation7 + $0x20] ss:$16 sps:$4 sm:$0xff]   ;;  %v3851_v13 = vld [vmem:[#allocation7 + $0x44] ss:$16 sps:$4 sm:$0xff]  }
  0x61   :  { %596 = vmatprep.subr.bf16.mxu1 %v3845_v9  ;;  %v3847_v14 = vld [vmem:[#allocation7 + $0x28] ss:$16 sps:$4 sm:$0xff]   ;;  %v3855_v15 = vld [vmem:[#allocation7 + $0x4c] ss:$16 sps:$4 sm:$0xff]   ;;  %v3856_v16 = vld [vmem:[#allocation7 + $0x40] ss:$16 sps:$4 sm:$0xff]  }
  0x62   :  { %144 = vmatpush1.bf16.msra.mxu0 %v3838_v4  ;;  %v3857_v17 = vld [vmem:[#allocation7 + $0x64] ss:$16 sps:$4 sm:$0xff]   ;;  %v3853_v18 = vld [vmem:[#allocation7 + $0x48] ss:$16 sps:$4 sm:$0xff]   ;;  %v3861_v19 = vld [vmem:[#allocation7 + $0x6c] ss:$16 sps:$4 sm:$0xff]  }
  0x63   :  { %635 = vmatprep.subr.bf16.mxu0 %v3843_v7  ;;  %v3862_v20 = vld [vmem:[#allocation7 + $0x60] ss:$16 sps:$4 sm:$0xff]   ;;  %v3863_v21 = vld [vmem:[#allocation7 + $0x84] ss:$16 sps:$4 sm:$0xff]   ;;  %v3859_v22 = vld [vmem:[#allocation7 + $0x68] ss:$16 sps:$4 sm:$0xff]  }
  0x64   :  { %597 = vmatpush1.bf16.msra.mxu1 %v3850_v12  ;;  %v3867_v23 = vld [vmem:[#allocation7 + $0x8c] ss:$16 sps:$4 sm:$0xff]   ;;  %v3868_v24 = vld [vmem:[#allocation7 + $0x80] ss:$16 sps:$4 sm:$0xff]   ;;  %v3869_v25 = vld [vmem:[#allocation7 + $0xa4] ss:$16 sps:$4 sm:$0xff]  }
  0x65   :  { %3320 = vmatmul.mubr.msk.bf16.vlgmr.msra.gmra.mrb[0].mxu0 %vm137_vm0, %v100_v6  ;;  %598 = vmatprep.subr.bf16.mxu1 %v3851_v13  ;;  %v3865_v26 = vld [vmem:[#allocation7 + $0x88] ss:$16 sps:$4 sm:$0xff]   ;;  %v3873_v27 = vld [vmem:[#allocation7 + $0xac] ss:$16 sps:$4 sm:$0xff]   ;;  %v3874_v28 = vld [vmem:[#allocation7 + $0xa0] ss:$16 sps:$4 sm:$0xff]  }
  0x66   :  { %636 = vmatpush1.bf16.msra.mxu0 %v3841_v10  ;;  %v3875_v29 = vld [vmem:[#allocation7 + $0xc4] ss:$16 sps:$4 sm:$0xff]   ;;  %v3871_v30 = vld [vmem:[#allocation7 + $0xa8] ss:$16 sps:$4 sm:$0xff]   ;;  %v3879_v31 = vld [vmem:[#allocation7 + $0xcc] ss:$16 sps:$4 sm:$0xff]  }
  0x67   :  { %637 = vmatprep.subr.bf16.mxu0 %v3849_v11  ;;  %v3880_v32 = vld [vmem:[#allocation7 + $0xc0] ss:$16 sps:$4 sm:$0xff]   ;;  %v3881_v33 = vld [vmem:[#allocation7 + $0xe4] ss:$16 sps:$4 sm:$0xff]   ;;  %v3877_v34 = vld [vmem:[#allocation7 + $0xc8] ss:$16 sps:$4 sm:$0xff]  }
  0x68   :  { %599 = vmatpush1.bf16.msra.mxu1 %v3856_v16  ;;  %v3885_v35 = vld [vmem:[#allocation7 + $0xec] ss:$16 sps:$4 sm:$0xff]   ;;  %v3886_v36 = vld [vmem:[#allocation7 + $0xe0] ss:$16 sps:$4 sm:$0xff]   ;;  %v3887_v37 = vld [vmem:[#allocation7 + $0x104] ss:$16 sps:$4 sm:$0xff]  }
  0x69   :  { %600 = vmatprep.subr.bf16.mxu1 %v3857_v17  ;;  %v3883_v38 = vld [vmem:[#allocation7 + $0xe8] ss:$16 sps:$4 sm:$0xff]   ;;  %v3891_v39 = vld [vmem:[#allocation7 + $0x10c] ss:$16 sps:$4 sm:$0xff]   ;;  %v3892_v40 = vld [vmem:[#allocation7 + $0x100] ss:$16 sps:$4 sm:$0xff]  }
  0x6a   :  { %638 = vmatpush1.bf16.msra.mxu0 %v3847_v14  ;;  %v3893_v41 = vld [vmem:[#allocation7 + $0x124] ss:$16 sps:$4 sm:$0xff]   ;;  %v3889_v42 = vld [vmem:[#allocation7 + $0x108] ss:$16 sps:$4 sm:$0xff]   ;;  %v3897_v43 = vld [vmem:[#allocation7 + $0x12c] ss:$16 sps:$4 sm:$0xff]   ;;  %v107_v14 = vlaneseq }
  0x6b   :  { %639 = vmatprep.subr.bf16.mxu0 %v3855_v15  ;;  %v3898_v44 = vld [vmem:[#allocation7 + $0x120] ss:$16 sps:$4 sm:$0xff]   ;;  %v3899_v45 = vld [vmem:[#allocation7 + $0x144] ss:$16 sps:$4 sm:$0xff]   ;;  %v3895_v46 = vld [vmem:[#allocation7 + $0x128] ss:$16 sps:$4 sm:$0xff]  }
  0x6c   :  { %601 = vmatpush1.bf16.msra.mxu1 %v3862_v20  ;;  %v3904_v47 = vld [vmem:[#allocation7 + $0x140] ss:$16 sps:$4 sm:$0xff]   ;;  %v3903_v48 = vld [vmem:[#allocation7 + $0x14c] ss:$16 sps:$4 sm:$0xff]   ;;  %v3905_v49 = vld [vmem:[#allocation7 + $0x164] ss:$16 sps:$4 sm:$0xff]  }
  0x6d   :  { %602 = vmatprep.subr.bf16.mxu1 %v3863_v21  ;;  %v3901_v50 = vld [vmem:[#allocation7 + $0x148] ss:$16 sps:$4 sm:$0xff]   ;;  %v3910_v51 = vld [vmem:[#allocation7 + $0x160] ss:$16 sps:$4 sm:$0xff]   ;;  %v3909_v52 = vld [vmem:[#allocation7 + $0x16c] ss:$16 sps:$4 sm:$0xff]  }
  0x6e   :  { %640 = vmatpush1.bf16.msra.mxu0 %v3853_v18  ;;  %v3911_v53 = vld [vmem:[#allocation7 + $0x184] ss:$16 sps:$4 sm:$0xff]   ;;  %v3907_v54 = vld [vmem:[#allocation7 + $0x168] ss:$16 sps:$4 sm:$0xff]   ;;  %v3916_v55 = vld [vmem:[#allocation7 + $0x180] ss:$16 sps:$4 sm:$0xff]  }
  0x6f   :  { %641 = vmatprep.subr.bf16.mxu0 %v3861_v19  ;;  %v3915_v56 = vld [vmem:[#allocation7 + $0x18c] ss:$16 sps:$4 sm:$0xff]   ;;  %v3917_v57 = vld [vmem:[#allocation7 + $0x1a4] ss:$16 sps:$4 sm:$0xff]   ;;  %v3913_v58 = vld [vmem:[#allocation7 + $0x188] ss:$16 sps:$4 sm:$0xff]  }
  0x70   :  { %603 = vmatpush1.bf16.msra.mxu1 %v3868_v24  ;;  %v3921_v59 = vld [vmem:[#allocation7 + $0x1ac] ss:$16 sps:$4 sm:$0xff]   ;;  %v3919_v60 = vld [vmem:[#allocation7 + $0x1a8] ss:$16 sps:$4 sm:$0xff]   ;;  %v3922_v61 = vld [vmem:[#allocation7 + $0x1a0] ss:$16 sps:$4 sm:$0xff]  }
  0x71   :  { %604 = vmatprep.subr.bf16.mxu1 %v3869_v25  ;;  %v3923_v62 = vld [vmem:[#allocation7 + $0x1c4] ss:$16 sps:$4 sm:$0xff]   ;;  %v3927_v63 = vld [vmem:[#allocation7 + $0x1cc] ss:$16 sps:$4 sm:$0xff]   ;;  %v3925_v0 = vld [vmem:[#allocation7 + $0x1c8] ss:$16 sps:$4 sm:$0xff]  }
  0x72   :  { %642 = vmatpush1.bf16.msra.mxu0 %v3859_v22  ;;  %v3928_v1 = vld [vmem:[#allocation7 + $0x1c0] ss:$16 sps:$4 sm:$0xff]   ;;  %v3929_v2 = vld [vmem:[#allocation7 + $0x1e4] ss:$16 sps:$4 sm:$0xff]   ;;  %v3933_v3 = vld [vmem:[#allocation7 + $0x1ec] ss:$16 sps:$4 sm:$0xff]  }
  0x73   :  { %643 = vmatprep.subr.bf16.mxu0 %v3867_v23  ;;  %v3931_v4 = vld [vmem:[#allocation7 + $0x1e8] ss:$16 sps:$4 sm:$0xff]   ;;  %v3934_v5 = vld [vmem:[#allocation7 + $0x1e0] ss:$16 sps:$4 sm:$0xff]   ;;  %v4273_v15 = vshrl.u32 %v107_v14, 7 }
  0x74   :  { %605 = vmatpush1.bf16.msra.mxu1 %v3874_v28  ;;  %v688_v6 = vld [vmem:[#allocation8] sm:$0xff]  ;;  %v689_v8 = vld [vmem:[#allocation8 + $0x8] sm:$0xff]  ;;  %v105_v17 = vld [vmem:[%s4370_s2] sm:$0x3] }
  0x75   :  { %606 = vmatprep.subr.bf16.mxu1 %v3875_v29  ;;  %v692_v7 = vld [vmem:[#allocation8 + $0x20] sm:$0xff]  ;;  %v693_v11 = vld [vmem:[#allocation8 + $0x28] sm:$0xff]  ;;  %v4276_v16 = vsub.s32 0, %v4273_v15  ;;  %v4282_v18 = vsub.s32 1, %v4273_v15 }
  0x76   :  { %644 = vmatpush1.bf16.msra.mxu0 %v3865_v26  ;;  %v3385_v9 = vcombine.low %v688_v6, %v692_v7  ;;  %v3386_v10 = vcombine.high %v688_v6, %v692_v7  ;;  %v3387_v12 = vcombine.low %v689_v8, %v693_v11  ;;  %v3388_v13 = vcombine.high %v689_v8, %v693_v11  ;;  %v736_v7 = vld [vmem:[#allocation8 + $0x180] sm:$0xff] }
  0x77   :  { %645 = vmatprep.subr.bf16.mxu0 %v3873_v27  ;;  %v110_v19 = vrot.slane %v105_v17, %v4276_v16  ;;  %v114_v20 = vrot.slane %v105_v17, %v4282_v18  ;;  %v740_v8 = vld [vmem:[#allocation8 + $0x1a0] sm:$0xff] }
  0x78   :  { %607 = vmatpush1.bf16.msra.mxu1 %v3880_v32  ;;  %v700_v32 = vld [vmem:[#allocation8 + $0x60] sm:$0xff] }
  0x79   :  { %608 = vmatprep.subr.bf16.mxu1 %v3881_v33  ;;  %v697_v33 = vld [vmem:[#allocation8 + $0x48] sm:$0xff]  ;;  %v744_v17 = vld [vmem:[#allocation8 + $0x1c0] sm:$0xff] }
  0x7a   :  { %646 = vmatpush1.bf16.msra.mxu0 %v3871_v30  ;;  %v696_v30 = vld [vmem:[#allocation8 + $0x40] sm:$0xff] }
  0x7b   :  { %647 = vmatprep.subr.bf16.mxu0 %v3879_v31 }
  0x7c   :  { %609 = vmatpush1.bf16.msra.mxu1 %v3886_v36 }
  0x7d   :  { %610 = vmatprep.subr.bf16.mxu1 %v3887_v37  ;;  %v3394_v37 = vcombine.high %v696_v30, %v700_v32 }
  0x7e   :  { %648 = vmatpush1.bf16.msra.mxu0 %v3877_v34  ;;  %v701_v34 = vld [vmem:[#allocation8 + $0x68] sm:$0xff] }
  0x7f   :  { %649 = vmatprep.subr.bf16.mxu0 %v3885_v35 }
  0x80   :  { %611 = vmatpush1.bf16.msra.mxu1 %v3892_v40  ;;  %v708_v40 = vld [vmem:[#allocation8 + $0xa0] sm:$0xff] }
  0x81   :  { %612 = vmatprep.subr.bf16.mxu1 %v3893_v41  ;;  %v705_v41 = vld [vmem:[#allocation8 + $0x88] sm:$0xff] }
  0x82   :  { %650 = vmatpush1.bf16.msra.mxu0 %v3883_v38  ;;  %v3396_v38 = vcombine.high %v697_v33, %v701_v34 }
  0x83   :  { %651 = vmatprep.subr.bf16.mxu0 %v3891_v39  ;;  %v704_v39 = vld [vmem:[#allocation8 + $0x80] sm:$0xff] }
  0x84   :  { %613 = vmatpush1.bf16.msra.mxu1 %v3898_v44  ;;  %v3395_v44 = vcombine.low %v697_v33, %v701_v34  ;;  %v760_v34 = vld [vmem:[#allocation8 + $0x240] sm:$0xff] }
  0x85   :  { %614 = vmatprep.subr.bf16.mxu1 %v3899_v45  ;;  %v3402_v45 = vcombine.high %v704_v39, %v708_v40 }
  0x86   :  { %652 = vmatpush1.bf16.msra.mxu0 %v3889_v42  ;;  %v709_v42 = vld [vmem:[#allocation8 + $0xa8] sm:$0xff] }
  0x87   :  { %653 = vmatprep.subr.bf16.mxu0 %v3897_v43  ;;  %v3393_v43 = vcombine.low %v696_v30, %v700_v32 }
  0x88   :  { %615 = vmatpush1.bf16.msra.mxu1 %v3904_v47  ;;  %v712_v47 = vld [vmem:[#allocation8 + $0xc0] sm:$0xff] }
  0x89   :  { %616 = vmatprep.subr.bf16.mxu1 %v3905_v49  ;;  %v713_v49 = vld [vmem:[#allocation8 + $0xc8] sm:$0xff] }
  0x8a   :  { %654 = vmatpush1.bf16.msra.mxu0 %v3895_v46  ;;  %v3404_v46 = vcombine.high %v705_v41, %v709_v42 }
  0x8b   :  { %655 = vmatprep.subr.bf16.mxu0 %v3903_v48  ;;  %v716_v48 = vld [vmem:[#allocation8 + $0xe0] sm:$0xff] }
  0x8c   :  { %617 = vmatpush1.bf16.msra.mxu1 %v3910_v51  ;;  %v3401_v51 = vcombine.low %v704_v39, %v708_v40 }
  0x8d   :  { %618 = vmatprep.subr.bf16.mxu1 %v3911_v53  ;;  %v3410_v53 = vcombine.high %v712_v47, %v716_v48 }
  0x8e   :  { %656 = vmatpush1.bf16.msra.mxu0 %v3901_v50  ;;  %v717_v50 = vld [vmem:[#allocation8 + $0xe8] sm:$0xff] }
  0x8f   :  { %657 = vmatprep.subr.bf16.mxu0 %v3909_v52  ;;  %v3403_v52 = vcombine.low %v705_v41, %v709_v42  ;;  %v768_v42 = vld [vmem:[#allocation8 + $0x280] sm:$0xff] }
  0x90   :  { %619 = vmatpush1.bf16.msra.mxu1 %v3916_v55  ;;  %v720_v55 = vld [vmem:[#allocation8 + $0x100] sm:$0xff] }
  0x91   :  { %620 = vmatprep.subr.bf16.mxu1 %v3917_v57  ;;  %v721_v57 = vld [vmem:[#allocation8 + $0x108] sm:$0xff] }
  0x92   :  { %658 = vmatpush1.bf16.msra.mxu0 %v3907_v54  ;;  %v3412_v54 = vcombine.high %v713_v49, %v717_v50 }
  0x93   :  { %659 = vmatprep.subr.bf16.mxu0 %v3915_v56  ;;  %v724_v56 = vld [vmem:[#allocation8 + $0x120] sm:$0xff] }
  0x94   :  { %621 = vmatpush1.bf16.msra.mxu1 %v3922_v61  ;;  %v3418_v61 = vcombine.high %v720_v55, %v724_v56 }
  0x95   :  { %622 = vmatprep.subr.bf16.mxu1 %v3923_v62 }
  0x96   :  { %660 = vmatpush1.bf16.msra.mxu0 %v3913_v58  ;;  %v725_v58 = vld [vmem:[#allocation8 + $0x128] sm:$0xff] }
  0x97   :  { %661 = vmatprep.subr.bf16.mxu0 %v3921_v59  ;;  %v3409_v59 = vcombine.low %v712_v47, %v716_v48  ;;  %v3420_v62 = vcombine.high %v721_v57, %v725_v58 }
  0x98   :  { %623 = vmatpush1.bf16.msra.mxu1 %v3928_v1  ;;  %v729_v1 = vld [vmem:[#allocation8 + $0x148] sm:$0xff] }
  0x99   :  { %624 = vmatprep.subr.bf16.mxu1 %v3929_v2  ;;  %v733_v2 = vld [vmem:[#allocation8 + $0x168] sm:$0xff] }
  0x9a   :  { %662 = vmatpush1.bf16.msra.mxu0 %v3919_v60  ;;  %v3411_v60 = vcombine.low %v713_v49, %v717_v50  ;;  %v3428_v6 = vcombine.high %v729_v1, %v733_v2  ;;  %v776_v50 = vld [vmem:[#allocation8 + $0x2c0] sm:$0xff] }
  0x9b   :  { %663 = vmatprep.subr.bf16.mxu0 %v3927_v63  ;;  %v728_v63 = vld [vmem:[#allocation8 + $0x140] sm:$0xff] }
  0x9c   :  { %625 = vmatpush1.bf16.msra.mxu1 %v3934_v5 }
  0x9d   :  { %2266 = vmatprep.subr.bf16.mxu1 %v3386_v10  ;;  %v741_v10 = vld [vmem:[#allocation8 + $0x1a8] sm:$0xff] }
  0x9e   :  { %664 = vmatpush1.bf16.msra.mxu0 %v3925_v0  ;;  %v732_v0 = vld [vmem:[#allocation8 + $0x160] sm:$0xff] }
  0x9f   :  { %665 = vmatprep.subr.bf16.mxu0 %v3933_v3  ;;  %v3417_v3 = vcombine.low %v720_v55, %v724_v56  ;;  %v3426_v5 = vcombine.high %v728_v63, %v732_v0  ;;  %v3425_v11 = vcombine.low %v728_v63, %v732_v0 }
  0xa2   :  { %666 = vmatpush1.bf16.msra.mxu0 %v3931_v4  ;;  %v3419_v4 = vcombine.low %v721_v57, %v725_v58  ;;  %v784_v58 = vld [vmem:[#allocation8 + $0x300] sm:$0xff] }
  0xa3   :  { %2348 = vmatprep.subr.bf16.mxu0 %v3388_v13  ;;  %v3434_v13 = vcombine.high %v736_v7, %v740_v8 }
 0x138   :  { %v175_v21 = vpop.f32.mrb[0].mxu0 }
 0x139   :  { %v176_v22 = vadd.f32 %v175_v21, %v110_v19  ;;  %v177_v23 = vpop.f32.mrb[1].mxu0  ;;  %v748_v19 = vld [vmem:[#allocation8 + $0x1e0] sm:$0xff]  ;;  %v749_v21 = vld [vmem:[#allocation8 + $0x1e8] sm:$0xff] }
 0x13a   :  { %v178_v24 = vadd.f32 %v177_v23, %v114_v20  ;;  %v179_v25 = vpop.f32.mrb[2].mxu0  ;;  %v745_v20 = vld [vmem:[#allocation8 + $0x1c8] sm:$0xff]  ;;  %v3441_v30 = vcombine.low %v744_v17, %v748_v19 }
 0x13b   :  { %v182_v26 = vmul.f32 0.2, %v176_v22  ;;  %v180_v27 = vpop.f32.mrb[3].mxu0  ;;  %v3444_v25 = vcombine.high %v745_v20, %v749_v21 }
 0x13c   :  { %v183_v28 = vmul.f32 0.2, %v178_v24  ;;  %v756_v27 = vld [vmem:[#allocation8 + $0x220] sm:$0xff] }
 0x13d   :  { %v184_v29 = vmax.f32 %v176_v22, %v182_v26  ;;  %v3433_v22 = vcombine.low %v736_v7, %v740_v8  ;;  %v752_v26 = vld [vmem:[#allocation8 + $0x200] sm:$0xff] }
 0x13e   :  { %v185_v31 = vmax.f32 %v178_v24, %v183_v28  ;;  %v3442_v24 = vcombine.high %v744_v17, %v748_v19  ;;  %v753_v28 = vld [vmem:[#allocation8 + $0x208] sm:$0xff]  ;;  %v3450_v32 = vcombine.high %v752_v26, %v756_v27 }
 0x13f   :  { %v186_v36 = vpack.c.bf16 %v184_v29, %v184_v29  ;;  %v757_v29 = vld [vmem:[#allocation8 + $0x228] sm:$0xff] }
 0x140   :  { %v187_v35 = vpack.c.bf16 %v185_v31, %v185_v31  ;;  %v3443_v31 = vcombine.low %v745_v20, %v749_v21  ;;  %v3452_v33 = vcombine.high %v753_v28, %v757_v29  ;;  %v3451_v39 = vcombine.low %v753_v28, %v757_v29  ;;  %v805_v19 = vld [vmem:[#allocation8 + $0x3a8] sm:$0xff] }
 0x142   :  { %626 = vmatprep.mubr.bf16.mxu1 %v187_v35  ;;  %667 = vmatprep.mubr.bf16.mxu0 %v187_v35  ;;  %v764_v35 = vld [vmem:[#allocation8 + $0x260] sm:$0xff] }
 0x143   :  { %627 = vmatmul.mubr.bf16.vlgmr.msra.gmra.mrb[0].mxu1 %v186_v36  ;;  %668 = vmatmul.mubr.bf16.vlgmr.msra.gmra.mrb[4].mxu0 %v186_v36  ;;  %v761_v36 = vld [vmem:[#allocation8 + $0x248] sm:$0xff]  ;;  %v3458_v40 = vcombine.high %v760_v34, %v764_v35 }
 0x144   :  { %2267 = vmatpush1.bf16.msra.mxu1 %v3385_v9  ;;  %2349 = vmatpush1.bf16.msra.mxu0 %v3387_v12  ;;  %v737_v9 = vld [vmem:[#allocation8 + $0x188] sm:$0xff]  ;;  %v3427_v12 = vcombine.low %v729_v1, %v733_v2  ;;  %v792_v2 = vld [vmem:[#allocation8 + $0x340] sm:$0xff] }
 0x145   :  { %2268 = vmatprep.subr.bf16.mxu1 %v3394_v37  ;;  %2350 = vmatprep.subr.bf16.mxu0 %v3396_v38  ;;  %v3436_v14 = vcombine.high %v737_v9, %v741_v10  ;;  %v3435_v23 = vcombine.low %v737_v9, %v741_v10  ;;  %v765_v37 = vld [vmem:[#allocation8 + $0x268] sm:$0xff]  ;;  %v3449_v38 = vcombine.low %v752_v26, %v756_v27 }
 0x146   :  { %v3460_v41 = vcombine.high %v761_v36, %v765_v37  ;;  %v3459_v47 = vcombine.low %v761_v36, %v765_v37  ;;  %v813_v27 = vld [vmem:[#allocation8 + $0x3e8] sm:$0xff] }
 0x148   :  { %2269 = vmatpush1.bf16.msra.mxu1 %v3393_v43  ;;  %2351 = vmatpush1.bf16.msra.mxu0 %v3395_v44  ;;  %v772_v43 = vld [vmem:[#allocation8 + $0x2a0] sm:$0xff]  ;;  %v769_v44 = vld [vmem:[#allocation8 + $0x288] sm:$0xff] }
 0x149   :  { %2270 = vmatprep.subr.bf16.mxu1 %v3402_v45  ;;  %2352 = vmatprep.subr.bf16.mxu0 %v3404_v46  ;;  %v773_v45 = vld [vmem:[#allocation8 + $0x2a8] sm:$0xff]  ;;  %v3457_v46 = vcombine.low %v760_v34, %v764_v35  ;;  %v3466_v48 = vcombine.high %v768_v42, %v772_v43 }
 0x14a   :  { %v3468_v49 = vcombine.high %v769_v44, %v773_v45  ;;  %v3467_v55 = vcombine.low %v769_v44, %v773_v45  ;;  %v821_v35 = vld [vmem:[#allocation8 + $0x428] sm:$0xff] }
 0x14c   :  { %2271 = vmatpush1.bf16.msra.mxu1 %v3401_v51  ;;  %2353 = vmatpush1.bf16.msra.mxu0 %v3403_v52  ;;  %v780_v51 = vld [vmem:[#allocation8 + $0x2e0] sm:$0xff]  ;;  %v777_v52 = vld [vmem:[#allocation8 + $0x2c8] sm:$0xff] }
 0x14d   :  { %2272 = vmatprep.subr.bf16.mxu1 %v3410_v53  ;;  %2354 = vmatprep.subr.bf16.mxu0 %v3412_v54  ;;  %v781_v53 = vld [vmem:[#allocation8 + $0x2e8] sm:$0xff]  ;;  %v3465_v54 = vcombine.low %v768_v42, %v772_v43  ;;  %v3474_v56 = vcombine.high %v776_v50, %v780_v51 }
 0x14e   :  { %v3476_v57 = vcombine.high %v777_v52, %v781_v53  ;;  %v3475_v63 = vcombine.low %v777_v52, %v781_v53 }
 0x150   :  { %2273 = vmatpush1.bf16.msra.mxu1 %v3409_v59  ;;  %2355 = vmatpush1.bf16.msra.mxu0 %v3411_v60  ;;  %v788_v59 = vld [vmem:[#allocation8 + $0x320] sm:$0xff]  ;;  %v785_v60 = vld [vmem:[#allocation8 + $0x308] sm:$0xff] }
 0x151   :  { %2274 = vmatprep.subr.bf16.mxu1 %v3418_v61  ;;  %2356 = vmatprep.subr.bf16.mxu0 %v3420_v62  ;;  %v789_v61 = vld [vmem:[#allocation8 + $0x328] sm:$0xff]  ;;  %v3473_v62 = vcombine.low %v776_v50, %v780_v51  ;;  %v3482_v0 = vcombine.high %v784_v58, %v788_v59 }
 0x152   :  { %v3484_v1 = vcombine.high %v785_v60, %v789_v61  ;;  %v3483_v7 = vcombine.low %v785_v60, %v789_v61  ;;  %v824_v60 = vld [vmem:[#allocation8 + $0x440] sm:$0xff] }
 0x154   :  { %2275 = vmatpush1.bf16.msra.mxu1 %v3417_v3  ;;  %2357 = vmatpush1.bf16.msra.mxu0 %v3419_v4  ;;  %v796_v3 = vld [vmem:[#allocation8 + $0x360] sm:$0xff]  ;;  %v793_v4 = vld [vmem:[#allocation8 + $0x348] sm:$0xff] }
 0x155   :  { %2276 = vmatprep.subr.bf16.mxu1 %v3426_v5  ;;  %2358 = vmatprep.subr.bf16.mxu0 %v3428_v6  ;;  %v797_v5 = vld [vmem:[#allocation8 + $0x368] sm:$0xff]  ;;  %v3481_v6 = vcombine.low %v784_v58, %v788_v59  ;;  %v3490_v8 = vcombine.high %v792_v2, %v796_v3  ;;  %v3489_v10 = vcombine.low %v792_v2, %v796_v3  ;;  %v832_v3 = vld [vmem:[#allocation8 + $0x480] sm:$0xff] }
 0x156   :  { %v3492_v9 = vcombine.high %v793_v4, %v797_v5 }
 0x158   :  { %2277 = vmatpush1.bf16.msra.mxu1 %v3425_v11  ;;  %2359 = vmatpush1.bf16.msra.mxu0 %v3427_v12  ;;  %v3491_v11 = vcombine.low %v793_v4, %v797_v5  ;;  %v800_v12 = vld [vmem:[#allocation8 + $0x380] sm:$0xff] }
 0x159   :  { %2278 = vmatprep.subr.bf16.mxu1 %v3434_v13  ;;  %2360 = vmatprep.subr.bf16.mxu0 %v3436_v14  ;;  %v804_v13 = vld [vmem:[#allocation8 + $0x3a0] sm:$0xff]  ;;  %v801_v14 = vld [vmem:[#allocation8 + $0x388] sm:$0xff] }
 0x15a   :  { %v3498_v17 = vcombine.high %v800_v12, %v804_v13  ;;  %v3497_v20 = vcombine.low %v800_v12, %v804_v13  ;;  %v3499_v21 = vcombine.low %v801_v14, %v805_v19 }
 0x15c   :  { %2279 = vmatpush1.bf16.msra.mxu1 %v3433_v22  ;;  %2361 = vmatpush1.bf16.msra.mxu0 %v3435_v23  ;;  %v3500_v22 = vcombine.high %v801_v14, %v805_v19  ;;  %v808_v23 = vld [vmem:[#allocation8 + $0x3c0] sm:$0xff]  ;;  %v841_v19 = vld [vmem:[#allocation8 + $0x4c8] sm:$0xff] }
 0x15d   :  { %2280 = vmatprep.subr.bf16.mxu1 %v3442_v24  ;;  %2362 = vmatprep.subr.bf16.mxu0 %v3444_v25  ;;  %v812_v24 = vld [vmem:[#allocation8 + $0x3e0] sm:$0xff]  ;;  %v809_v25 = vld [vmem:[#allocation8 + $0x3c8] sm:$0xff] }
 0x15e   :  { %v3506_v26 = vcombine.high %v808_v23, %v812_v24  ;;  %v3505_v28 = vcombine.low %v808_v23, %v812_v24  ;;  %v3507_v29 = vcombine.low %v809_v25, %v813_v27  ;;  %v840_v14 = vld [vmem:[#allocation8 + $0x4c0] sm:$0xff] }
 0x160   :  { %2281 = vmatpush1.bf16.msra.mxu1 %v3441_v30  ;;  %2363 = vmatpush1.bf16.msra.mxu0 %v3443_v31  ;;  %v3508_v30 = vcombine.high %v809_v25, %v813_v27  ;;  %v816_v31 = vld [vmem:[#allocation8 + $0x400] sm:$0xff]  ;;  %v849_v27 = vld [vmem:[#allocation8 + $0x508] sm:$0xff] }
 0x161   :  { %2282 = vmatprep.subr.bf16.mxu1 %v3450_v32  ;;  %2364 = vmatprep.subr.bf16.mxu0 %v3452_v33  ;;  %v820_v32 = vld [vmem:[#allocation8 + $0x420] sm:$0xff]  ;;  %v817_v33 = vld [vmem:[#allocation8 + $0x408] sm:$0xff] }
 0x162   :  { %v3514_v34 = vcombine.high %v816_v31, %v820_v32  ;;  %v3513_v36 = vcombine.low %v816_v31, %v820_v32  ;;  %v3515_v37 = vcombine.low %v817_v33, %v821_v35  ;;  %v848_v25 = vld [vmem:[#allocation8 + $0x500] sm:$0xff] }
 0x164   :  { %2283 = vmatpush1.bf16.msra.mxu1 %v3449_v38  ;;  %2365 = vmatpush1.bf16.msra.mxu0 %v3451_v39  ;;  %v3516_v38 = vcombine.high %v817_v33, %v821_v35  ;;  %v4289_v39 = vld [vmem:[%s4372_s4] sm:$0xf]  ;;  %v856_v33 = vld [vmem:[#allocation8 + $0x540] sm:$0xff]  ;;  %v857_v35 = vld [vmem:[#allocation8 + $0x548] sm:$0xff] }
 0x165   :  { %2284 = vmatprep.subr.bf16.mxu1 %v3458_v40  ;;  %2366 = vmatprep.subr.bf16.mxu0 %v3460_v41  ;;  %v268_v40 = vsub.s32 3, %v4273_v15  ;;  %v257_v41 = vrot.slane %v4289_v39, %v4276_v16  ;;  %v261_v42 = vrot.slane %v4289_v39, %v4282_v18 }
 0x167   :  { %v269_v43 = vrot.slane %v4289_v39, %v268_v40 }
 0x168   :  { %2285 = vmatpush1.bf16.msra.mxu1 %v3457_v46  ;;  %2367 = vmatpush1.bf16.msra.mxu0 %v3459_v47 }
 0x169   :  { %2286 = vmatprep.subr.bf16.mxu1 %v3466_v48  ;;  %2368 = vmatprep.subr.bf16.mxu0 %v3468_v49 }
 0x16c   :  { %2287 = vmatpush1.bf16.msra.mxu1 %v3465_v54  ;;  %2369 = vmatpush1.bf16.msra.mxu0 %v3467_v55 }
 0x16d   :  { %2288 = vmatprep.subr.bf16.mxu1 %v3474_v56  ;;  %2370 = vmatprep.subr.bf16.mxu0 %v3476_v57 }
 0x170   :  { %2289 = vmatpush1.bf16.msra.mxu1 %v3473_v62  ;;  %2371 = vmatpush1.bf16.msra.mxu0 %v3475_v63  ;;  %v828_v62 = vld [vmem:[#allocation8 + $0x460] sm:$0xff]  ;;  %v825_v63 = vld [vmem:[#allocation8 + $0x448] sm:$0xff] }
 0x171   :  { %2290 = vmatprep.subr.bf16.mxu1 %v3482_v0  ;;  %2372 = vmatprep.subr.bf16.mxu0 %v3484_v1  ;;  %v829_v0 = vld [vmem:[#allocation8 + $0x468] sm:$0xff]  ;;  %v3522_v4 = vcombine.high %v824_v60, %v828_v62 }
 0x172   :  { %v3524_v5 = vcombine.high %v825_v63, %v829_v0 }
 0x174   :  { %2291 = vmatpush1.bf16.msra.mxu1 %v3481_v6  ;;  %2373 = vmatpush1.bf16.msra.mxu0 %v3483_v7  ;;  %v836_v6 = vld [vmem:[#allocation8 + $0x4a0] sm:$0xff]  ;;  %v833_v7 = vld [vmem:[#allocation8 + $0x488] sm:$0xff] }
 0x175   :  { %2292 = vmatprep.subr.bf16.mxu1 %v3490_v8  ;;  %2374 = vmatprep.subr.bf16.mxu0 %v3492_v9  ;;  %v837_v8 = vld [vmem:[#allocation8 + $0x4a8] sm:$0xff]  ;;  %v3530_v12 = vcombine.high %v832_v3, %v836_v6 }
 0x176   :  { %v3532_v13 = vcombine.high %v833_v7, %v837_v8 }
 0x178   :  { %2293 = vmatpush1.bf16.msra.mxu1 %v3489_v10  ;;  %2375 = vmatpush1.bf16.msra.mxu0 %v3491_v11  ;;  %v3521_v10 = vcombine.low %v824_v60, %v828_v62  ;;  %v3523_v11 = vcombine.low %v825_v63, %v829_v0  ;;  %v880_v60 = vld [vmem:[#allocation8 + $0x600] sm:$0xff]  ;;  %v881_v62 = vld [vmem:[#allocation8 + $0x608] sm:$0xff] }
 0x179   :  { %2294 = vmatprep.subr.bf16.mxu1 %v3498_v17  ;;  %2376 = vmatprep.subr.bf16.mxu0 %v3500_v22  ;;  %v844_v17 = vld [vmem:[#allocation8 + $0x4e0] sm:$0xff]  ;;  %v3531_v22 = vcombine.low %v833_v7, %v837_v8  ;;  %v885_v63 = vld [vmem:[#allocation8 + $0x628] sm:$0xff] }
 0x17a   :  { %v3538_v23 = vcombine.high %v840_v14, %v844_v17  ;;  %v892_v7 = vld [vmem:[#allocation8 + $0x660] sm:$0xff]  ;;  %v889_v8 = vld [vmem:[#allocation8 + $0x648] sm:$0xff] }
 0x17c   :  { %2295 = vmatpush1.bf16.msra.mxu1 %v3497_v20  ;;  %2377 = vmatpush1.bf16.msra.mxu0 %v3499_v21  ;;  %v845_v20 = vld [vmem:[#allocation8 + $0x4e8] sm:$0xff]  ;;  %v3529_v21 = vcombine.low %v832_v3, %v836_v6  ;;  %v888_v6 = vld [vmem:[#allocation8 + $0x640] sm:$0xff] }
 0x17d   :  { %2296 = vmatprep.subr.bf16.mxu1 %v3506_v26  ;;  %2378 = vmatprep.subr.bf16.mxu0 %v3508_v30  ;;  %v3540_v24 = vcombine.high %v841_v19, %v845_v20  ;;  %v852_v26 = vld [vmem:[#allocation8 + $0x520] sm:$0xff]  ;;  %v3539_v30 = vcombine.low %v841_v19, %v845_v20  ;;  %v897_v20 = vld [vmem:[#allocation8 + $0x688] sm:$0xff] }
 0x17e   :  { %v3546_v31 = vcombine.high %v848_v25, %v852_v26  ;;  %v900_v19 = vld [vmem:[#allocation8 + $0x6a0] sm:$0xff] }
 0x180   :  { %2297 = vmatpush1.bf16.msra.mxu1 %v3505_v28  ;;  %2379 = vmatpush1.bf16.msra.mxu0 %v3507_v29  ;;  %v853_v28 = vld [vmem:[#allocation8 + $0x528] sm:$0xff]  ;;  %v3537_v29 = vcombine.low %v840_v14, %v844_v17  ;;  %v896_v17 = vld [vmem:[#allocation8 + $0x680] sm:$0xff] }
 0x181   :  { %2307 = vmatprep.subr.bf16.mxu1 %v3514_v34  ;;  %2389 = vmatprep.subr.bf16.mxu0 %v3516_v38  ;;  %v3548_v32 = vcombine.high %v849_v27, %v853_v28  ;;  %v860_v34 = vld [vmem:[#allocation8 + $0x560] sm:$0xff]  ;;  %v3547_v38 = vcombine.low %v849_v27, %v853_v28  ;;  %v905_v28 = vld [vmem:[#allocation8 + $0x6c8] sm:$0xff] }
 0x182   :  { %v908_v27 = vld [vmem:[#allocation8 + $0x6e0] sm:$0xff] }
 0x216   :  { %v628_v44 = vpop.f32.mrb[0].mxu1  ;;  %v4299_v45 = vpop.f32.mrb[4].mxu0 }
 0x217   :  { %v629_v46 = vadd.f32 %v628_v44, %v257_v41  ;;  %v630_v47 = vpop.f32.mrb[1].mxu1  ;;  %v671_v48 = vpop.f32.mrb[5].mxu0  ;;  %v3554_v41 = vcombine.high %v856_v33, %v860_v34  ;;  %v868_v44 = vld [vmem:[#allocation8 + $0x5a0] sm:$0xff] }
 0x218   :  { %v631_v49 = vadd.f32 %v630_v47, %v261_v42  ;;  %v672_v50 = vadd.f32 %v671_v48, %v269_v43  ;;  %v632_v51 = vpop.f32.mrb[2].mxu1  ;;  %v673_v52 = vpop.f32.mrb[6].mxu0  ;;  %v864_v43 = vld [vmem:[#allocation8 + $0x580] sm:$0xff]  ;;  %v869_v47 = vld [vmem:[#allocation8 + $0x5a8] sm:$0xff]  ;;  %v3553_v48 = vcombine.low %v856_v33, %v860_v34 }
 0x219   :  { %v676_v53 = vmul.f32 0.2, %v629_v46  ;;  %v633_v54 = vpop.f32.mrb[3].mxu1  ;;  %v674_v55 = vpop.f32.mrb[7].mxu0  ;;  %v872_v52 = vld [vmem:[#allocation8 + $0x5c0] sm:$0xff] }
 0x21a   :  { %v677_v56 = vmul.f32 0.2, %v631_v49  ;;  %v679_v57 = vmul.f32 0.2, %v672_v50  ;;  %v873_v54 = vld [vmem:[#allocation8 + $0x5c8] sm:$0xff]  ;;  %v912_v34 = vld [vmem:[#allocation8 + $0x700] sm:$0xff] }
 0x21b   :  { %v680_v58 = vmax.f32 %v629_v46, %v676_v53  ;;  %v865_v46 = vld [vmem:[#allocation8 + $0x588] sm:$0xff]  ;;  %v876_v53 = vld [vmem:[#allocation8 + $0x5e0] sm:$0xff] }
 0x21c   :  { %v681_v59 = vmax.f32 %v631_v49, %v677_v56  ;;  %v683_v61 = vmax.f32 %v672_v50, %v679_v57  ;;  %v3562_v50 = vcombine.high %v864_v43, %v868_v44  ;;  %v3564_v51 = vcombine.high %v865_v46, %v869_v47  ;;  %v877_v55 = vld [vmem:[#allocation8 + $0x5e8] sm:$0xff] }
 0x21d   :  { %v4303_v2 = vpack.c.bf16 %v680_v58, %v680_v58  ;;  %v3561_v56 = vcombine.low %v864_v43, %v868_v44  ;;  %v3563_v57 = vcombine.low %v865_v46, %v869_v47  ;;  %v3570_v58 = vcombine.high %v872_v52, %v876_v53  ;;  %v920_v46 = vld [vmem:[#allocation8 + $0x740] sm:$0xff] }
 0x21e   :  { %v4301_v1 = vpack.c.bf16 %v681_v59, %v681_v59  ;;  %v4307_v9 = vpack.c.bf16 %v683_v61, %v683_v61  ;;  %v3572_v59 = vcombine.high %v873_v54, %v877_v55  ;;  %v884_v61 = vld [vmem:[#allocation8 + $0x620] sm:$0xff]  ;;  %v3569_v0 = vcombine.low %v872_v52, %v876_v53 }
 0x21f   :  { %v3571_v3 = vcombine.low %v873_v54, %v877_v55  ;;  %v924_v47 = vld [vmem:[#allocation8 + $0x760] sm:$0xff] }
 0x220   :  { %2298 = vmatprep.mubr.bf16.mxu1 %v4301_v1  ;;  %2380 = vmatprep.mubr.bf16.mxu0 %v4301_v1  ;;  %v3618_v53 = vcombine.high %v920_v46, %v924_v47  ;;  %v928_v55 = vld [vmem:[#allocation8 + $0x780] sm:$0xff] }
 0x221   :  { %2299 = vmatmul.mubr.bf16.vlgmr.msra.gmra.mrb[4].mxu1 %v4303_v2  ;;  %2381 = vmatmul.mubr.bf16.vlgmr.msra.gmra.mrb[8].mxu0 %v4303_v2 }
 0x222   :  { %2308 = vmatpush1.bf16.msra.mxu1 %v3513_v36  ;;  %2390 = vmatpush1.bf16.msra.mxu0 %v3515_v37  ;;  %v861_v36 = vld [vmem:[#allocation8 + $0x568] sm:$0xff]  ;;  %v3545_v37 = vcombine.low %v848_v25, %v852_v26  ;;  %v904_v26 = vld [vmem:[#allocation8 + $0x6c0] sm:$0xff] }
 0x223   :  { %2339 = vmatprep.mubr.bf16.mxu1 %v4307_v9  ;;  %2421 = vmatprep.mubr.bf16.mxu0 %v4307_v9  ;;  %v3556_v42 = vcombine.high %v857_v35, %v861_v36  ;;  %v3555_v49 = vcombine.low %v857_v35, %v861_v36  ;;  %v916_v35 = vld [vmem:[#allocation8 + $0x720] sm:$0xff]  ;;  %v913_v36 = vld [vmem:[#allocation8 + $0x708] sm:$0xff] }
 0x224   :  { %2309 = vmatprep.subr.bf16.mxu1 %v3522_v4  ;;  %2391 = vmatprep.subr.bf16.mxu0 %v3524_v5  ;;  %v3578_v4 = vcombine.high %v880_v60, %v884_v61  ;;  %v3580_v5 = vcombine.high %v881_v62, %v885_v63  ;;  %v3610_v43 = vcombine.high %v912_v34, %v916_v35 }
 0x226   :  { %2310 = vmatpush1.bf16.msra.mxu1 %v3521_v10  ;;  %2392 = vmatpush1.bf16.msra.mxu0 %v3523_v11  ;;  %v893_v10 = vld [vmem:[#allocation8 + $0x668] sm:$0xff]  ;;  %v3577_v11 = vcombine.low %v880_v60, %v884_v61 }
 0x227   :  { %2311 = vmatprep.subr.bf16.mxu1 %v3530_v12  ;;  %2393 = vmatprep.subr.bf16.mxu0 %v3532_v13  ;;  %v3579_v12 = vcombine.low %v881_v62, %v885_v63  ;;  %v3586_v13 = vcombine.high %v888_v6, %v892_v7  ;;  %v3588_v14 = vcombine.high %v889_v8, %v893_v10 }
 0x22a   :  { %2312 = vmatpush1.bf16.msra.mxu1 %v3529_v21  ;;  %2394 = vmatpush1.bf16.msra.mxu0 %v3531_v22  ;;  %v901_v21 = vld [vmem:[#allocation8 + $0x6a8] sm:$0xff]  ;;  %v3585_v22 = vcombine.low %v888_v6, %v892_v7 }
 0x22b   :  { %2313 = vmatprep.subr.bf16.mxu1 %v3538_v23  ;;  %2395 = vmatprep.subr.bf16.mxu0 %v3540_v24  ;;  %v3587_v23 = vcombine.low %v889_v8, %v893_v10  ;;  %v3594_v24 = vcombine.high %v896_v17, %v900_v19  ;;  %v3596_v25 = vcombine.high %v897_v20, %v901_v21 }
 0x22e   :  { %2314 = vmatpush1.bf16.msra.mxu1 %v3537_v29  ;;  %2396 = vmatpush1.bf16.msra.mxu0 %v3539_v30  ;;  %v909_v29 = vld [vmem:[#allocation8 + $0x6e8] sm:$0xff]  ;;  %v3593_v30 = vcombine.low %v896_v17, %v900_v19 }
 0x22f   :  { %2315 = vmatprep.subr.bf16.mxu1 %v3546_v31  ;;  %2397 = vmatprep.subr.bf16.mxu0 %v3548_v32  ;;  %v3595_v31 = vcombine.low %v897_v20, %v901_v21  ;;  %v3602_v32 = vcombine.high %v904_v26, %v908_v27  ;;  %v3604_v33 = vcombine.high %v905_v28, %v909_v29 }
 0x232   :  { %2316 = vmatpush1.bf16.msra.mxu1 %v3545_v37  ;;  %2398 = vmatpush1.bf16.msra.mxu0 %v3547_v38  ;;  %v917_v37 = vld [vmem:[#allocation8 + $0x728] sm:$0xff]  ;;  %v3601_v38 = vcombine.low %v904_v26, %v908_v27 }
 0x233   :  { %2317 = vmatprep.subr.bf16.mxu1 %v3554_v41  ;;  %2399 = vmatprep.subr.bf16.mxu0 %v3556_v42  ;;  %v3603_v41 = vcombine.low %v905_v28, %v909_v29  ;;  %v264_v42 = vsub.s32 2, %v4273_v15  ;;  %v3612_v44 = vcombine.high %v913_v36, %v917_v37 }
 0x235   :  { %v265_v52 = vrot.slane %v4289_v39, %v264_v42  ;;  %v940_v39 = vld [vmem:[#allocation8 + $0x7e0] sm:$0xff] }
 0x236   :  { %2318 = vmatpush1.bf16.msra.mxu1 %v3553_v48  ;;  %2400 = vmatpush1.bf16.msra.mxu0 %v3555_v49  ;;  %v921_v48 = vld [vmem:[#allocation8 + $0x748] sm:$0xff] }
 0x237   :  { %2319 = vmatprep.subr.bf16.mxu1 %v3562_v50  ;;  %2401 = vmatprep.subr.bf16.mxu0 %v3564_v51  ;;  %v925_v49 = vld [vmem:[#allocation8 + $0x768] sm:$0xff]  ;;  %v3609_v50 = vcombine.low %v912_v34, %v916_v35  ;;  %v3611_v51 = vcombine.low %v913_v36, %v917_v37  ;;  %v670_v61 = vadd.f32 %v4299_v45, %v265_v52  ;;  %v691_v45 = vld [vmem:[#allocation8 + $0x18] sm:$0xff]  ;;  %v726_v52 = vld [vmem:[#allocation8 + $0x130] sm:$0xff] }
 0x238   :  { %v3620_v54 = vcombine.high %v921_v48, %v925_v49  ;;  %v3619_v60 = vcombine.low %v921_v48, %v925_v49  ;;  %v711_v34 = vld [vmem:[#allocation8 + $0xb8] sm:$0xff] }
 0x239   :  { %v678_v7 = vmul.f32 0.2, %v670_v61 }
 0x23a   :  { %2320 = vmatpush1.bf16.msra.mxu1 %v3561_v56  ;;  %2402 = vmatpush1.bf16.msra.mxu0 %v3563_v57  ;;  %v932_v56 = vld [vmem:[#allocation8 + $0x7a0] sm:$0xff]  ;;  %v929_v57 = vld [vmem:[#allocation8 + $0x788] sm:$0xff] }
 0x23b   :  { %2321 = vmatprep.subr.bf16.mxu1 %v3570_v58  ;;  %2403 = vmatprep.subr.bf16.mxu0 %v3572_v59  ;;  %v933_v58 = vld [vmem:[#allocation8 + $0x7a8] sm:$0xff]  ;;  %v3617_v59 = vcombine.low %v920_v46, %v924_v47  ;;  %v3626_v62 = vcombine.high %v928_v55, %v932_v56  ;;  %v682_v19 = vmax.f32 %v670_v61, %v678_v7  ;;  %v719_v46 = vld [vmem:[#allocation8 + $0xf8] sm:$0xff] }
 0x23c   :  { %v3628_v63 = vcombine.high %v929_v57, %v933_v58  ;;  %v3627_v6 = vcombine.low %v929_v57, %v933_v58  ;;  %v730_v58 = vld [vmem:[#allocation8 + $0x150] sm:$0xff]  ;;  %v735_v61 = vld [vmem:[#allocation8 + $0x178] sm:$0xff] }
 0x23d   :  { %v4318_v27 = vpack.c.bf16 %v682_v19, %v682_v19 }
 0x23e   :  { %2322 = vmatpush1.bf16.msra.mxu1 %v3569_v0  ;;  %2404 = vmatpush1.bf16.msra.mxu0 %v3571_v3  ;;  %v936_v0 = vld [vmem:[#allocation8 + $0x7c0] sm:$0xff]  ;;  %v937_v3 = vld [vmem:[#allocation8 + $0x7c8] sm:$0xff] }
 0x23f   :  { %2323 = vmatprep.subr.bf16.mxu1 %v3578_v4  ;;  %2405 = vmatprep.subr.bf16.mxu0 %v3580_v5  ;;  %v941_v4 = vld [vmem:[#allocation8 + $0x7e8] sm:$0xff]  ;;  %v3625_v5 = vcombine.low %v928_v55, %v932_v56  ;;  %v3634_v8 = vcombine.high %v936_v0, %v940_v39 }
 0x240   :  { %v3636_v10 = vcombine.high %v937_v3, %v941_v4  ;;  %v3635_v17 = vcombine.low %v937_v3, %v941_v4  ;;  %v738_v3 = vld [vmem:[#allocation8 + $0x190] sm:$0xff] }
 0x241   :  { %v742_v4 = vld [vmem:[#allocation8 + $0x1b0] sm:$0xff] }
 0x242   :  { %2324 = vmatpush1.bf16.msra.mxu1 %v3577_v11  ;;  %2406 = vmatpush1.bf16.msra.mxu0 %v3579_v12  ;;  %v690_v11 = vld [vmem:[#allocation8 + $0x10] sm:$0xff] }
 0x243   :  { %2325 = vmatprep.subr.bf16.mxu1 %v3586_v13  ;;  %2407 = vmatprep.subr.bf16.mxu0 %v3588_v14  ;;  %v694_v12 = vld [vmem:[#allocation8 + $0x30] sm:$0xff]  ;;  %v695_v13 = vld [vmem:[#allocation8 + $0x38] sm:$0xff]  ;;  %v3633_v14 = vcombine.low %v936_v0, %v940_v39 }
 0x244   :  { %v3390_v20 = vcombine.high %v690_v11, %v694_v12  ;;  %v3392_v21 = vcombine.high %v691_v45, %v695_v13  ;;  %v3389_v26 = vcombine.low %v690_v11, %v694_v12  ;;  %v3391_v28 = vcombine.low %v691_v45, %v695_v13  ;;  %v746_v12 = vld [vmem:[#allocation8 + $0x1d0] sm:$0xff]  ;;  %v747_v13 = vld [vmem:[#allocation8 + $0x1d8] sm:$0xff] }
 0x245   :  { %v750_v45 = vld [vmem:[#allocation8 + $0x1f0] sm:$0xff] }
 0x246   :  { %2326 = vmatpush1.bf16.msra.mxu1 %v3585_v22  ;;  %2408 = vmatpush1.bf16.msra.mxu0 %v3587_v23  ;;  %v698_v22 = vld [vmem:[#allocation8 + $0x50] sm:$0xff] }
 0x247   :  { %2327 = vmatprep.subr.bf16.mxu1 %v3594_v24  ;;  %2409 = vmatprep.subr.bf16.mxu0 %v3596_v25  ;;  %v702_v23 = vld [vmem:[#allocation8 + $0x70] sm:$0xff]  ;;  %v699_v24 = vld [vmem:[#allocation8 + $0x58] sm:$0xff] }
 0x248   :  { %v703_v25 = vld [vmem:[#allocation8 + $0x78] sm:$0xff]  ;;  %v3398_v29 = vcombine.high %v698_v22, %v702_v23  ;;  %v3397_v35 = vcombine.low %v698_v22, %v702_v23  ;;  %v754_v22 = vld [vmem:[#allocation8 + $0x210] sm:$0xff] }
 0x249   :  { %v3399_v36 = vcombine.low %v699_v24, %v703_v25  ;;  %v758_v23 = vld [vmem:[#allocation8 + $0x230] sm:$0xff] }
 0x24a   :  { %2328 = vmatpush1.bf16.msra.mxu1 %v3593_v30  ;;  %2410 = vmatpush1.bf16.msra.mxu0 %v3595_v31  ;;  %v3400_v30 = vcombine.high %v699_v24, %v703_v25  ;;  %v706_v31 = vld [vmem:[#allocation8 + $0x90] sm:$0xff]  ;;  %v755_v24 = vld [vmem:[#allocation8 + $0x218] sm:$0xff] }
 0x24b   :  { %2329 = vmatprep.subr.bf16.mxu1 %v3602_v32  ;;  %2411 = vmatprep.subr.bf16.mxu0 %v3604_v33  ;;  %v710_v32 = vld [vmem:[#allocation8 + $0xb0] sm:$0xff]  ;;  %v707_v33 = vld [vmem:[#allocation8 + $0x98] sm:$0xff] }
 0x24c   :  { %v3406_v37 = vcombine.high %v706_v31, %v710_v32  ;;  %v3405_v47 = vcombine.low %v706_v31, %v710_v32  ;;  %v3407_v48 = vcombine.low %v707_v33, %v711_v34  ;;  %v759_v25 = vld [vmem:[#allocation8 + $0x238] sm:$0xff]  ;;  %v762_v31 = vld [vmem:[#allocation8 + $0x250] sm:$0xff] }
 0x24d   :  { %v766_v32 = vld [vmem:[#allocation8 + $0x270] sm:$0xff] }
 0x24e   :  { %2330 = vmatpush1.bf16.msra.mxu1 %v3601_v38  ;;  %2412 = vmatpush1.bf16.msra.mxu0 %v3603_v41  ;;  %v3408_v38 = vcombine.high %v707_v33, %v711_v34  ;;  %v714_v41 = vld [vmem:[#allocation8 + $0xd0] sm:$0xff]  ;;  %v763_v33 = vld [vmem:[#allocation8 + $0x258] sm:$0xff] }
 0x24f   :  { %2331 = vmatprep.subr.bf16.mxu1 %v3610_v43  ;;  %2413 = vmatprep.subr.bf16.mxu0 %v3612_v44  ;;  %v718_v43 = vld [vmem:[#allocation8 + $0xf0] sm:$0xff]  ;;  %v715_v44 = vld [vmem:[#allocation8 + $0xd8] sm:$0xff] }
 0x250   :  { %v3414_v49 = vcombine.high %v714_v41, %v718_v43  ;;  %v3415_v55 = vcombine.low %v715_v44, %v719_v46  ;;  %v767_v34 = vld [vmem:[#allocation8 + $0x278] sm:$0xff] }
 0x252   :  { %2332 = vmatpush1.bf16.msra.mxu1 %v3609_v50  ;;  %2414 = vmatpush1.bf16.msra.mxu0 %v3611_v51  ;;  %v3416_v50 = vcombine.high %v715_v44, %v719_v46  ;;  %v722_v51 = vld [vmem:[#allocation8 + $0x110] sm:$0xff]  ;;  %v771_v44 = vld [vmem:[#allocation8 + $0x298] sm:$0xff] }
 0x253   :  { %2333 = vmatprep.subr.bf16.mxu1 %v3618_v53  ;;  %2415 = vmatprep.subr.bf16.mxu0 %v3620_v54  ;;  %v727_v53 = vld [vmem:[#allocation8 + $0x138] sm:$0xff]  ;;  %v3413_v54 = vcombine.low %v714_v41, %v718_v43  ;;  %v3422_v56 = vcombine.high %v722_v51, %v726_v52  ;;  %v770_v41 = vld [vmem:[#allocation8 + $0x290] sm:$0xff] }
 0x254   :  { %v774_v43 = vld [vmem:[#allocation8 + $0x2b0] sm:$0xff]  ;;  %v775_v46 = vld [vmem:[#allocation8 + $0x2b8] sm:$0xff] }
 0x256   :  { %2334 = vmatpush1.bf16.msra.mxu1 %v3617_v59  ;;  %2416 = vmatpush1.bf16.msra.mxu0 %v3619_v60  ;;  %v734_v59 = vld [vmem:[#allocation8 + $0x170] sm:$0xff]  ;;  %v731_v60 = vld [vmem:[#allocation8 + $0x158] sm:$0xff] }
 0x257   :  { %2335 = vmatprep.subr.bf16.mxu1 %v3626_v62  ;;  %2417 = vmatprep.subr.bf16.mxu0 %v3628_v63  ;;  %v3421_v62 = vcombine.low %v722_v51, %v726_v52  ;;  %v3430_v0 = vcombine.high %v730_v58, %v734_v59  ;;  %v3432_v39 = vcombine.high %v731_v60, %v735_v61  ;;  %v778_v51 = vld [vmem:[#allocation8 + $0x2d0] sm:$0xff] }
 0x258   :  { %v3429_v7 = vcombine.low %v730_v58, %v734_v59  ;;  %v782_v52 = vld [vmem:[#allocation8 + $0x2f0] sm:$0xff] }
 0x259   :  { %v786_v58 = vld [vmem:[#allocation8 + $0x310] sm:$0xff] }
 0x25a   :  { %2336 = vmatpush1.bf16.msra.mxu1 %v3625_v5  ;;  %2418 = vmatpush1.bf16.msra.mxu0 %v3627_v6  ;;  %v739_v5 = vld [vmem:[#allocation8 + $0x198] sm:$0xff]  ;;  %v790_v59 = vld [vmem:[#allocation8 + $0x330] sm:$0xff] }
 0x25b   :  { %2337 = vmatprep.subr.bf16.mxu1 %v3634_v8  ;;  %2419 = vmatprep.subr.bf16.mxu0 %v3636_v10  ;;  %v743_v6 = vld [vmem:[#allocation8 + $0x1b8] sm:$0xff]  ;;  %v3431_v8 = vcombine.low %v731_v60, %v735_v61  ;;  %v3438_v10 = vcombine.high %v738_v3, %v742_v4 }
 0x25c   :  { %v3440_v11 = vcombine.high %v739_v5, %v743_v6  ;;  %v3439_v19 = vcombine.low %v739_v5, %v743_v6  ;;  %v787_v60 = vld [vmem:[#allocation8 + $0x318] sm:$0xff] }
 0x25d   :  { %v791_v61 = vld [vmem:[#allocation8 + $0x338] sm:$0xff] }
 0x25e   :  { %2338 = vmatpush1.bf16.msra.mxu1 %v3633_v14  ;;  %2420 = vmatpush1.bf16.msra.mxu0 %v3635_v17  ;;  %v751_v14 = vld [vmem:[#allocation8 + $0x1f8] sm:$0xff]  ;;  %v3437_v17 = vcombine.low %v738_v3, %v742_v4  ;;  %v794_v3 = vld [vmem:[#allocation8 + $0x350] sm:$0xff] }
 0x25f   :  { %2430 = vmatprep.subr.bf16.mxu1 %v3390_v20  ;;  %2512 = vmatprep.subr.bf16.mxu0 %v3392_v21  ;;  %v3446_v20 = vcombine.high %v746_v12, %v750_v45  ;;  %v3448_v21 = vcombine.high %v747_v13, %v751_v14  ;;  %v798_v4 = vld [vmem:[#allocation8 + $0x370] sm:$0xff]  ;;  %v795_v5 = vld [vmem:[#allocation8 + $0x358] sm:$0xff] }
 0x260   :  { %v799_v6 = vld [vmem:[#allocation8 + $0x378] sm:$0xff] }
 0x261   :  { %2340 = vmatmul.mubr.bf16.vlgmr.msra.gmra.mrb[4].mxu1 %v4318_v27  ;;  %2422 = vmatmul.mubr.bf16.vlgmr.msra.gmra.mrb[8].mxu0 %v4318_v27 }
 0x262   :  { %2431 = vmatpush1.bf16.msra.mxu1 %v3389_v26  ;;  %2462 = vmatprep.mubr.bf16.mxu1 %v4301_v1  ;;  %v3445_v26 = vcombine.low %v746_v12, %v750_v45  ;;  %v802_v12 = vld [vmem:[#allocation8 + $0x390] sm:$0xff] }
 0x263   :  { %2513 = vmatpush1.bf16.msra.mxu0 %v3391_v28  ;;  %2544 = vmatprep.mubr.bf16.mxu0 %v4301_v1  ;;  %v723_v1 = vld [vmem:[#allocation8 + $0x118] sm:$0xff]  ;;  %v3447_v28 = vcombine.low %v747_v13, %v751_v14  ;;  %v806_v45 = vld [vmem:[#allocation8 + $0x3b0] sm:$0xff] }
 0x264   :  { %2432 = vmatprep.subr.bf16.mxu1 %v3398_v29  ;;  %2514 = vmatprep.subr.bf16.mxu0 %v3400_v30  ;;  %v3424_v57 = vcombine.high %v723_v1, %v727_v53  ;;  %v3423_v63 = vcombine.low %v723_v1, %v727_v53  ;;  %v3454_v29 = vcombine.high %v754_v22, %v758_v23  ;;  %v779_v1 = vld [vmem:[#allocation8 + $0x2d8] sm:$0xff] }
 0x265   :  { %v3456_v30 = vcombine.high %v755_v24, %v759_v25  ;;  %v783_v53 = vld [vmem:[#allocation8 + $0x2f8] sm:$0xff] }
 0x266   :  { %2433 = vmatpush1.bf16.msra.mxu1 %v3397_v35  ;;  %v3453_v35 = vcombine.low %v754_v22, %v758_v23  ;;  %v803_v13 = vld [vmem:[#allocation8 + $0x398] sm:$0xff]  ;;  %v810_v22 = vld [vmem:[#allocation8 + $0x3d0] sm:$0xff] }
 0x267   :  { %2515 = vmatpush1.bf16.msra.mxu0 %v3399_v36  ;;  %2434 = vmatprep.subr.bf16.mxu1 %v3406_v37  ;;  %v3455_v36 = vcombine.low %v755_v24, %v759_v25  ;;  %v3462_v37 = vcombine.high %v762_v31, %v766_v32  ;;  %v807_v14 = vld [vmem:[#allocation8 + $0x3b8] sm:$0xff]  ;;  %v814_v23 = vld [vmem:[#allocation8 + $0x3f0] sm:$0xff] }
 0x268   :  { %2516 = vmatprep.subr.bf16.mxu0 %v3408_v38  ;;  %v3464_v38 = vcombine.high %v763_v33, %v767_v34  ;;  %v811_v24 = vld [vmem:[#allocation8 + $0x3d8] sm:$0xff] }
 0x269   :  { %v815_v25 = vld [vmem:[#allocation8 + $0x3f8] sm:$0xff] }
 0x26a   :  { %2435 = vmatpush1.bf16.msra.mxu1 %v3405_v47  ;;  %v3461_v47 = vcombine.low %v762_v31, %v766_v32  ;;  %v818_v31 = vld [vmem:[#allocation8 + $0x410] sm:$0xff] }
 0x26b   :  { %2517 = vmatpush1.bf16.msra.mxu0 %v3407_v48  ;;  %2436 = vmatprep.subr.bf16.mxu1 %v3414_v49  ;;  %v3463_v48 = vcombine.low %v763_v33, %v767_v34  ;;  %v3470_v49 = vcombine.high %v770_v41, %v774_v43  ;;  %v822_v32 = vld [vmem:[#allocation8 + $0x430] sm:$0xff]  ;;  %v819_v33 = vld [vmem:[#allocation8 + $0x418] sm:$0xff] }
 0x26c   :  { %2518 = vmatprep.subr.bf16.mxu0 %v3416_v50  ;;  %v3472_v50 = vcombine.high %v771_v44, %v775_v46  ;;  %v823_v34 = vld [vmem:[#allocation8 + $0x438] sm:$0xff] }
 0x26e   :  { %2437 = vmatpush1.bf16.msra.mxu1 %v3413_v54  ;;  %v3469_v54 = vcombine.low %v770_v41, %v774_v43  ;;  %v826_v41 = vld [vmem:[#allocation8 + $0x450] sm:$0xff] }
 0x26f   :  { %2519 = vmatpush1.bf16.msra.mxu0 %v3415_v55  ;;  %2438 = vmatprep.subr.bf16.mxu1 %v3422_v56  ;;  %v3471_v55 = vcombine.low %v771_v44, %v775_v46  ;;  %v3478_v56 = vcombine.high %v778_v51, %v782_v52  ;;  %v830_v43 = vld [vmem:[#allocation8 + $0x470] sm:$0xff]  ;;  %v3517_v44 = vcombine.low %v818_v31, %v822_v32  ;;  %v827_v46 = vld [vmem:[#allocation8 + $0x458] sm:$0xff] }
 0x270   :  { %2520 = vmatprep.subr.bf16.mxu0 %v3424_v57  ;;  %v3480_v57 = vcombine.high %v779_v1, %v783_v53 }
 0x272   :  { %2439 = vmatpush1.bf16.msra.mxu1 %v3421_v62  ;;  %v3477_v62 = vcombine.low %v778_v51, %v782_v52  ;;  %v838_v51 = vld [vmem:[#allocation8 + $0x4b0] sm:$0xff] }
 0x273   :  { %2521 = vmatpush1.bf16.msra.mxu0 %v3423_v63  ;;  %2440 = vmatprep.subr.bf16.mxu1 %v3430_v0  ;;  %v3479_v63 = vcombine.low %v779_v1, %v783_v53  ;;  %v3486_v0 = vcombine.high %v786_v58, %v790_v59  ;;  %v835_v1 = vld [vmem:[#allocation8 + $0x498] sm:$0xff] }
 0x274   :  { %2522 = vmatprep.subr.bf16.mxu0 %v3432_v39  ;;  %v3488_v39 = vcombine.high %v787_v60, %v791_v61  ;;  %v839_v53 = vld [vmem:[#allocation8 + $0x4b8] sm:$0xff] }
 0x276   :  { %2441 = vmatpush1.bf16.msra.mxu1 %v3429_v7  ;;  %v3485_v7 = vcombine.low %v786_v58, %v790_v59  ;;  %v842_v58 = vld [vmem:[#allocation8 + $0x4d0] sm:$0xff] }
 0x277   :  { %2523 = vmatpush1.bf16.msra.mxu0 %v3431_v8  ;;  %2442 = vmatprep.subr.bf16.mxu1 %v3438_v10  ;;  %v3487_v8 = vcombine.low %v787_v60, %v791_v61  ;;  %v3494_v10 = vcombine.high %v794_v3, %v798_v4  ;;  %v846_v59 = vld [vmem:[#allocation8 + $0x4f0] sm:$0xff]  ;;  %v843_v60 = vld [vmem:[#allocation8 + $0x4d8] sm:$0xff] }
 0x278   :  { %2524 = vmatprep.subr.bf16.mxu0 %v3440_v11  ;;  %v3496_v11 = vcombine.high %v795_v5, %v799_v6  ;;  %v847_v61 = vld [vmem:[#allocation8 + $0x4f8] sm:$0xff] }
 0x27a   :  { %2443 = vmatpush1.bf16.msra.mxu1 %v3437_v17  ;;  %v3493_v17 = vcombine.low %v794_v3, %v798_v4  ;;  %v854_v3 = vld [vmem:[#allocation8 + $0x530] sm:$0xff]  ;;  %v851_v4 = vld [vmem:[#allocation8 + $0x518] sm:$0xff] }
 0x27b   :  { %2525 = vmatpush1.bf16.msra.mxu0 %v3439_v19  ;;  %2444 = vmatprep.subr.bf16.mxu1 %v3446_v20  ;;  %v3495_v19 = vcombine.low %v795_v5, %v799_v6  ;;  %v3502_v20 = vcombine.high %v802_v12, %v806_v45  ;;  %v855_v5 = vld [vmem:[#allocation8 + $0x538] sm:$0xff]  ;;  %v3543_v6 = vcombine.low %v843_v60, %v847_v61 }
 0x27c   :  { %2526 = vmatprep.subr.bf16.mxu0 %v3448_v21  ;;  %v3504_v21 = vcombine.high %v803_v13, %v807_v14 }
 0x27e   :  { %2445 = vmatpush1.bf16.msra.mxu1 %v3445_v26  ;;  %v3501_v26 = vcombine.low %v802_v12, %v806_v45  ;;  %v859_v12 = vld [vmem:[#allocation8 + $0x558] sm:$0xff] }
 0x27f   :  { %2527 = vmatpush1.bf16.msra.mxu0 %v3447_v28  ;;  %2446 = vmatprep.subr.bf16.mxu1 %v3454_v29  ;;  %v3503_v28 = vcombine.low %v803_v13, %v807_v14  ;;  %v3510_v29 = vcombine.high %v810_v22, %v814_v23  ;;  %v863_v45 = vld [vmem:[#allocation8 + $0x578] sm:$0xff]  ;;  %v3551_v14 = vcombine.low %v851_v4, %v855_v5 }
 0x280   :  { %2528 = vmatprep.subr.bf16.mxu0 %v3456_v30  ;;  %v3512_v30 = vcombine.high %v811_v24, %v815_v25 }
 0x282   :  { %2447 = vmatpush1.bf16.msra.mxu1 %v3453_v35  ;;  %v3509_v35 = vcombine.low %v810_v22, %v814_v23  ;;  %v867_v22 = vld [vmem:[#allocation8 + $0x598] sm:$0xff] }
 0x283   :  { %2529 = vmatpush1.bf16.msra.mxu0 %v3455_v36  ;;  %2448 = vmatprep.subr.bf16.mxu1 %v3462_v37  ;;  %v3511_v36 = vcombine.low %v811_v24, %v815_v25  ;;  %v3518_v37 = vcombine.high %v818_v31, %v822_v32  ;;  %v871_v23 = vld [vmem:[#allocation8 + $0x5b8] sm:$0xff]  ;;  %v3559_v25 = vcombine.low %v859_v12, %v863_v45 }
 0x284   :  { %2530 = vmatprep.subr.bf16.mxu0 %v3464_v38  ;;  %v3520_v38 = vcombine.high %v819_v33, %v823_v34  ;;  %v875_v31 = vld [vmem:[#allocation8 + $0x5d8] sm:$0xff] }
 0x285   :  { %v879_v32 = vld [vmem:[#allocation8 + $0x5f8] sm:$0xff] }
 0x286   :  { %2449 = vmatpush1.bf16.msra.mxu1 %v3461_v47  ;;  %v831_v47 = vld [vmem:[#allocation8 + $0x478] sm:$0xff] }
 0x287   :  { %2531 = vmatpush1.bf16.msra.mxu0 %v3463_v48  ;;  %2450 = vmatprep.subr.bf16.mxu1 %v3470_v49  ;;  %v3519_v48 = vcombine.low %v819_v33, %v823_v34  ;;  %v3526_v49 = vcombine.high %v826_v41, %v830_v43  ;;  %v3528_v52 = vcombine.high %v827_v46, %v831_v47 }
 0x288   :  { %2532 = vmatprep.subr.bf16.mxu0 %v3472_v50  ;;  %v834_v50 = vld [vmem:[#allocation8 + $0x490] sm:$0xff]  ;;  %v3567_v34 = vcombine.low %v867_v22, %v871_v23 }
 0x28a   :  { %2451 = vmatpush1.bf16.msra.mxu1 %v3469_v54  ;;  %v3525_v54 = vcombine.low %v826_v41, %v830_v43  ;;  %v883_v41 = vld [vmem:[#allocation8 + $0x618] sm:$0xff] }
 0x28b   :  { %2533 = vmatpush1.bf16.msra.mxu0 %v3471_v55  ;;  %2452 = vmatprep.subr.bf16.mxu1 %v3478_v56  ;;  %v3527_v55 = vcombine.low %v827_v46, %v831_v47  ;;  %v3534_v56 = vcombine.high %v834_v50, %v838_v51  ;;  %v887_v43 = vld [vmem:[#allocation8 + $0x638] sm:$0xff]  ;;  %v3575_v46 = vcombine.low %v875_v31, %v879_v32 }
 0x28c   :  { %2534 = vmatprep.subr.bf16.mxu0 %v3480_v57  ;;  %v3536_v57 = vcombine.high %v835_v1, %v839_v53 }
 0x28e   :  { %2453 = vmatpush1.bf16.msra.mxu1 %v3477_v62  ;;  %v3533_v62 = vcombine.low %v834_v50, %v838_v51  ;;  %v894_v50 = vld [vmem:[#allocation8 + $0x670] sm:$0xff]  ;;  %v891_v51 = vld [vmem:[#allocation8 + $0x658] sm:$0xff] }
 0x28f   :  { %2535 = vmatpush1.bf16.msra.mxu0 %v3479_v63  ;;  %2454 = vmatprep.subr.bf16.mxu1 %v3486_v0  ;;  %v3542_v63 = vcombine.high %v842_v58, %v846_v59  ;;  %v3544_v0 = vcombine.high %v843_v60, %v847_v61 }
 0x290   :  { %2536 = vmatprep.subr.bf16.mxu0 %v3488_v39  ;;  %v850_v39 = vld [vmem:[#allocation8 + $0x510] sm:$0xff] }
 0x291   :  { %v3549_v13 = vcombine.low %v850_v39, %v854_v3 }
 0x292   :  { %2455 = vmatpush1.bf16.msra.mxu1 %v3485_v7  ;;  %v3550_v7 = vcombine.high %v850_v39, %v854_v3  ;;  %v907_v39 = vld [vmem:[#allocation8 + $0x6d8] sm:$0xff] }
 0x293   :  { %2537 = vmatpush1.bf16.msra.mxu0 %v3487_v8  ;;  %2456 = vmatprep.subr.bf16.mxu1 %v3494_v10  ;;  %v3552_v8 = vcombine.high %v851_v4, %v855_v5  ;;  %v858_v10 = vld [vmem:[#allocation8 + $0x550] sm:$0xff]  ;;  %v911_v3 = vld [vmem:[#allocation8 + $0x6f8] sm:$0xff] }
 0x294   :  { %2538 = vmatprep.subr.bf16.mxu0 %v3496_v11  ;;  %v862_v11 = vld [vmem:[#allocation8 + $0x570] sm:$0xff] }
 0x295   :  { %v3557_v24 = vcombine.low %v858_v10, %v862_v11 }
 0x296   :  { %2457 = vmatpush1.bf16.msra.mxu1 %v3493_v17  ;;  %v3558_v17 = vcombine.high %v858_v10, %v862_v11  ;;  %v915_v10 = vld [vmem:[#allocation8 + $0x718] sm:$0xff] }
 0x297   :  { %2539 = vmatpush1.bf16.msra.mxu0 %v3495_v19  ;;  %2458 = vmatprep.subr.bf16.mxu1 %v3502_v20  ;;  %v3560_v19 = vcombine.high %v859_v12, %v863_v45  ;;  %v866_v20 = vld [vmem:[#allocation8 + $0x590] sm:$0xff]  ;;  %v919_v11 = vld [vmem:[#allocation8 + $0x738] sm:$0xff]  ;;  %v3607_v45 = vcombine.low %v907_v39, %v911_v3 }
 0x298   :  { %2540 = vmatprep.subr.bf16.mxu0 %v3504_v21  ;;  %v870_v21 = vld [vmem:[#allocation8 + $0x5b0] sm:$0xff] }
 0x299   :  { %v3565_v33 = vcombine.low %v866_v20, %v870_v21 }
 0x29a   :  { %2459 = vmatpush1.bf16.msra.mxu1 %v3501_v26  ;;  %v3566_v26 = vcombine.high %v866_v20, %v870_v21  ;;  %v923_v20 = vld [vmem:[#allocation8 + $0x758] sm:$0xff] }
 0x29b   :  { %2541 = vmatpush1.bf16.msra.mxu0 %v3503_v28  ;;  %2460 = vmatprep.subr.bf16.mxu1 %v3510_v29  ;;  %v3568_v28 = vcombine.high %v867_v22, %v871_v23  ;;  %v874_v29 = vld [vmem:[#allocation8 + $0x5d0] sm:$0xff]  ;;  %v927_v21 = vld [vmem:[#allocation8 + $0x778] sm:$0xff]  ;;  %v3615_v23 = vcombine.low %v915_v10, %v919_v11 }
 0x29c   :  { %2542 = vmatprep.subr.bf16.mxu0 %v3512_v30  ;;  %v878_v30 = vld [vmem:[#allocation8 + $0x5f0] sm:$0xff] }
 0x29e   :  { %2461 = vmatpush1.bf16.msra.mxu1 %v3509_v35  ;;  %v3574_v35 = vcombine.high %v874_v29, %v878_v30 }
 0x29f   :  { %2543 = vmatpush1.bf16.msra.mxu0 %v3511_v36  ;;  %2471 = vmatprep.subr.bf16.mxu1 %v3518_v37  ;;  %v3576_v36 = vcombine.high %v875_v31, %v879_v32  ;;  %v882_v37 = vld [vmem:[#allocation8 + $0x610] sm:$0xff]  ;;  %v3623_v32 = vcombine.low %v923_v20, %v927_v21 }
 0x2a0   :  { %2553 = vmatprep.subr.bf16.mxu0 %v3520_v38  ;;  %v886_v38 = vld [vmem:[#allocation8 + $0x630] sm:$0xff] }
 0x2a1   :  { %2463 = vmatmul.mubr.bf16.vlgmr.msra.gmra.mrb[8].mxu1 %v4303_v2  ;;  %v3582_v47 = vcombine.high %v882_v37, %v886_v38 }
 0x2a2   :  { %2545 = vmatmul.mubr.bf16.vlgmr.msra.gmra.mrb[12].mxu0 %v4303_v2  ;;  %2472 = vmatpush1.bf16.msra.mxu1 %v3517_v44  ;;  %v3535_v2 = vcombine.low %v835_v1, %v839_v53  ;;  %v3573_v44 = vcombine.low %v874_v29, %v878_v30  ;;  %v3581_v1 = vcombine.low %v882_v37, %v886_v38  ;;  %v931_v29 = vld [vmem:[#allocation8 + $0x798] sm:$0xff] }
 0x2a3   :  { %2503 = vmatprep.mubr.bf16.mxu1 %v4307_v9  ;;  %2554 = vmatpush1.bf16.msra.mxu0 %v3519_v48  ;;  %v3584_v48 = vcombine.high %v883_v41, %v887_v43  ;;  %v3583_v53 = vcombine.low %v883_v41, %v887_v43  ;;  %v935_v30 = vld [vmem:[#allocation8 + $0x7b8] sm:$0xff] }
 0x2a4   :  { %2585 = vmatprep.mubr.bf16.mxu0 %v4307_v9  ;;  %2473 = vmatprep.subr.bf16.mxu1 %v3526_v49  ;;  %v3541_v9 = vcombine.low %v842_v58, %v846_v59  ;;  %v890_v49 = vld [vmem:[#allocation8 + $0x650] sm:$0xff]  ;;  %v899_v58 = vld [vmem:[#allocation8 + $0x698] sm:$0xff]  ;;  %v3631_v43 = vcombine.low %v931_v29, %v935_v30 }
 0x2a5   :  { %2555 = vmatprep.subr.bf16.mxu0 %v3528_v52  ;;  %v895_v52 = vld [vmem:[#allocation8 + $0x678] sm:$0xff]  ;;  %v3589_v60 = vcombine.low %v890_v49, %v894_v50 }
 0x2a6   :  { %2474 = vmatpush1.bf16.msra.mxu1 %v3525_v54  ;;  %v3590_v54 = vcombine.high %v890_v49, %v894_v50  ;;  %v903_v59 = vld [vmem:[#allocation8 + $0x6b8] sm:$0xff]  ;;  %v3591_v61 = vcombine.low %v891_v51, %v895_v52  ;;  %v3935_v49 = vld [vmem:[#allocation10 + $0x40] sm:$0xff]  }
 0x2a7   :  { %2556 = vmatpush1.bf16.msra.mxu0 %v3527_v55  ;;  %2475 = vmatprep.subr.bf16.mxu1 %v3534_v56  ;;  %v3592_v55 = vcombine.high %v891_v51, %v895_v52  ;;  %v898_v56 = vld [vmem:[#allocation8 + $0x690] sm:$0xff]  ;;  %v3599_v5 = vcombine.low %v899_v58, %v903_v59  ;;  %v939_v37 = vld [vmem:[#allocation8 + $0x7d8] sm:$0xff]  ;;  %v3936_v50 = vld [vmem:[#allocation10 + $0xc0] sm:$0xff]  }
 0x2a8   :  { %2557 = vmatprep.subr.bf16.mxu0 %v3536_v57  ;;  %v902_v57 = vld [vmem:[#allocation8 + $0x6b0] sm:$0xff]  ;;  %v943_v38 = vld [vmem:[#allocation8 + $0x7f8] sm:$0xff]  ;;  %v3937_v51 = vld [vmem:[#allocation10] sm:$0xff]  }
 0x2a9   :  { %v3597_v4 = vcombine.low %v898_v56, %v902_v57  ;;  %v3938_v52 = vld [vmem:[#allocation10 + $0x80] sm:$0xff]  }
 0x2aa   :  { %2476 = vmatpush1.bf16.msra.mxu1 %v3533_v62  ;;  %v3598_v62 = vcombine.high %v898_v56, %v902_v57  ;;  %v3943_v56 = vld [vmem:[#allocation10 + $0x50] sm:$0xff]  }
 0x2ab   :  { %2558 = vmatpush1.bf16.msra.mxu0 %v3535_v2  ;;  %2477 = vmatprep.subr.bf16.mxu1 %v3542_v63  ;;  %v3600_v2 = vcombine.high %v899_v58, %v903_v59  ;;  %v906_v63 = vld [vmem:[#allocation8 + $0x6d0] sm:$0xff] }
 0x2ac   :  { %2559 = vmatprep.subr.bf16.mxu0 %v3544_v0  ;;  %v910_v0 = vld [vmem:[#allocation8 + $0x6f0] sm:$0xff] }
 0x2ad   :  { %v3605_v12 = vcombine.low %v906_v63, %v910_v0  ;;  %v3944_v57 = vld [vmem:[#allocation10 + $0xd0] sm:$0xff]  }
 0x2ae   :  { %2478 = vmatpush1.bf16.msra.mxu1 %v3541_v9  ;;  %v3606_v9 = vcombine.high %v906_v63, %v910_v0  ;;  %v3945_v58 = vld [vmem:[#allocation10 + $0x10] sm:$0xff]   ;;  %v3952_v63 = vld [vmem:[#allocation10 + $0xe0] sm:$0xff]  }
 0x2af   :  { %2560 = vmatpush1.bf16.msra.mxu0 %v3543_v6  ;;  %2479 = vmatprep.subr.bf16.mxu1 %v3550_v7  ;;  %v3608_v6 = vcombine.high %v907_v39, %v911_v3  ;;  %v914_v7 = vld [vmem:[#allocation8 + $0x710] sm:$0xff]  ;;  %v3953_v0 = vld [vmem:[#allocation10 + $0x20] sm:$0xff]   ;;  %v3955_v3 = vld [vmem:[#allocation10 + $0x68] sm:$0xff]  }
 0x2b0   :  { %2561 = vmatprep.subr.bf16.mxu0 %v3552_v8  ;;  %v918_v8 = vld [vmem:[#allocation8 + $0x730] sm:$0xff]  ;;  %v3954_v39 = vld [vmem:[#allocation10 + $0xa0] sm:$0xff]  }
 0x2b1   :  { %v3613_v22 = vcombine.low %v914_v7, %v918_v8  ;;  %v3946_v59 = vld [vmem:[#allocation10 + $0x90] sm:$0xff]  }
 0x2b2   :  { %2480 = vmatpush1.bf16.msra.mxu1 %v3549_v13  ;;  %v3614_v13 = vcombine.high %v914_v7, %v918_v8  ;;  %v3960_v7 = vld [vmem:[#allocation10 + $0xf0] sm:$0xff]  }
 0x2b3   :  { %2562 = vmatpush1.bf16.msra.mxu0 %v3551_v14  ;;  %2481 = vmatprep.subr.bf16.mxu1 %v3558_v17  ;;  %v3616_v14 = vcombine.high %v915_v10, %v919_v11  ;;  %v922_v17 = vld [vmem:[#allocation8 + $0x750] sm:$0xff]  ;;  %v3963_v11 = vld [vmem:[#allocation10 + $0x78] sm:$0xff]  }
 0x2b4   :  { %2563 = vmatprep.subr.bf16.mxu0 %v3560_v19  ;;  %v926_v19 = vld [vmem:[#allocation8 + $0x770] sm:$0xff] }
 0x2b5   :  { %v3621_v31 = vcombine.low %v922_v17, %v926_v19  ;;  %v3961_v8 = vld [vmem:[#allocation10 + $0x30] sm:$0xff]  }
 0x2b6   :  { %2482 = vmatpush1.bf16.msra.mxu1 %v3557_v24  ;;  %v3622_v24 = vcombine.high %v922_v17, %v926_v19  ;;  %v3962_v10 = vld [vmem:[#allocation10 + $0xb0] sm:$0xff]   ;;  %v3968_v17 = vld [vmem:[#allocation10 + $0x1c0] sm:$0xff]  }
 0x2b7   :  { %2564 = vmatpush1.bf16.msra.mxu0 %v3559_v25  ;;  %2483 = vmatprep.subr.bf16.mxu1 %v3566_v26  ;;  %v3624_v25 = vcombine.high %v923_v20, %v927_v21  ;;  %v930_v26 = vld [vmem:[#allocation8 + $0x790] sm:$0xff] }
 0x2b8   :  { %2565 = vmatprep.subr.bf16.mxu0 %v3568_v28  ;;  %v934_v28 = vld [vmem:[#allocation8 + $0x7b0] sm:$0xff] }
 0x2b9   :  { %v3629_v41 = vcombine.low %v930_v26, %v934_v28  ;;  %v4333_v19 = vld [vmem:[%s4374_s6] sm:$0xff] }
 0x2ba   :  { %2484 = vmatpush1.bf16.msra.mxu1 %v3565_v33  ;;  %v3630_v33 = vcombine.high %v930_v26, %v934_v28  ;;  %v949_v20 = vrot.slane %v4333_v19, %v4276_v16  ;;  %v957_v21 = vrot.slane %v4333_v19, %v264_v42 }
 0x2bb   :  { %2566 = vmatpush1.bf16.msra.mxu0 %v3567_v34  ;;  %2485 = vmatprep.subr.bf16.mxu1 %v3574_v35  ;;  %v3632_v34 = vcombine.high %v931_v29, %v935_v30  ;;  %v938_v35 = vld [vmem:[#allocation8 + $0x7d0] sm:$0xff] }
 0x2bc   :  { %2567 = vmatprep.subr.bf16.mxu0 %v3576_v36  ;;  %v942_v36 = vld [vmem:[#allocation8 + $0x7f0] sm:$0xff] }
 0x2be   :  { %2486 = vmatpush1.bf16.msra.mxu1 %v3573_v44  ;;  %v3638_v44 = vcombine.high %v938_v35, %v942_v36 }
 0x2bf   :  { %2568 = vmatpush1.bf16.msra.mxu0 %v3575_v46  ;;  %2487 = vmatprep.subr.bf16.mxu1 %v3582_v47  ;;  %v3640_v46 = vcombine.high %v939_v37, %v943_v38  ;;  %v3637_v47 = vcombine.low %v938_v35, %v942_v36 }
 0x2c0   :  { %2569 = vmatprep.subr.bf16.mxu0 %v3584_v48  ;;  %v3639_v48 = vcombine.low %v939_v37, %v943_v38 }
 0x2c2   :  { %2488 = vmatpush1.bf16.msra.mxu1 %v3581_v1  ;;  %v3939_v1 = vld [vmem:[#allocation10 + $0x48] sm:$0xff]  }
 0x2c3   :  { %2570 = vmatpush1.bf16.msra.mxu0 %v3583_v53  ;;  %2489 = vmatprep.subr.bf16.mxu1 %v3590_v54  ;;  %v3940_v53 = vld [vmem:[#allocation10 + $0xc8] sm:$0xff]  }
 0x2c4   :  { %2571 = vmatprep.subr.bf16.mxu0 %v3592_v55  ;;  %v3941_v54 = vld [vmem:[#allocation10 + $0x8] sm:$0xff]  }
 0x2c5   :  { %v3942_v55 = vld [vmem:[#allocation10 + $0x88] sm:$0xff]  }
 0x2c6   :  { %2490 = vmatpush1.bf16.msra.mxu1 %v3589_v60  ;;  %v3947_v60 = vld [vmem:[#allocation10 + $0x58] sm:$0xff]  }
 0x2c7   :  { %2572 = vmatpush1.bf16.msra.mxu0 %v3591_v61  ;;  %2491 = vmatprep.subr.bf16.mxu1 %v3598_v62  ;;  %v3948_v61 = vld [vmem:[#allocation10 + $0xd8] sm:$0xff]  }
 0x2c8   :  { %2573 = vmatprep.subr.bf16.mxu0 %v3600_v2  ;;  %v3949_v62 = vld [vmem:[#allocation10 + $0x18] sm:$0xff]   ;;  %v3951_v2 = vld [vmem:[#allocation10 + $0x60] sm:$0xff]  }
 0x2ca   :  { %2492 = vmatpush1.bf16.msra.mxu1 %v3597_v4  ;;  %v3956_v4 = vld [vmem:[#allocation10 + $0xe8] sm:$0xff]  }
 0x2cb   :  { %2574 = vmatpush1.bf16.msra.mxu0 %v3599_v5  ;;  %2493 = vmatprep.subr.bf16.mxu1 %v3606_v9  ;;  %v3957_v5 = vld [vmem:[#allocation10 + $0x28] sm:$0xff]  }
 0x2cc   :  { %2575 = vmatprep.subr.bf16.mxu0 %v3608_v6  ;;  %v3958_v9 = vld [vmem:[#allocation10 + $0xa8] sm:$0xff]   ;;  %v3959_v6 = vld [vmem:[#allocation10 + $0x70] sm:$0xff]  }
 0x2ce   :  { %2494 = vmatpush1.bf16.msra.mxu1 %v3605_v12  ;;  %v3964_v12 = vld [vmem:[#allocation10 + $0xf8] sm:$0xff]  }
 0x2cf   :  { %2576 = vmatpush1.bf16.msra.mxu0 %v3607_v45  ;;  %2495 = vmatprep.subr.bf16.mxu1 %v3614_v13  ;;  %v3965_v45 = vld [vmem:[#allocation10 + $0x38] sm:$0xff]  }
 0x2d0   :  { %2577 = vmatprep.subr.bf16.mxu0 %v3616_v14  ;;  %v3966_v13 = vld [vmem:[#allocation10 + $0xb8] sm:$0xff]   ;;  %v3967_v14 = vld [vmem:[#allocation10 + $0x140] sm:$0xff]  }
 0x2d2   :  { %2496 = vmatpush1.bf16.msra.mxu1 %v3613_v22  ;;  %v953_v22 = vrot.slane %v4333_v19, %v4282_v18 }
 0x2d3   :  { %2578 = vmatpush1.bf16.msra.mxu0 %v3615_v23  ;;  %2497 = vmatprep.subr.bf16.mxu1 %v3622_v24  ;;  %v961_v23 = vrot.slane %v4333_v19, %v268_v40 }
 0x2d4   :  { %2579 = vmatprep.subr.bf16.mxu0 %v3624_v25 }
 0x2d6   :  { %2498 = vmatpush1.bf16.msra.mxu1 %v3621_v31 }
 0x2d7   :  { %2580 = vmatpush1.bf16.msra.mxu0 %v3623_v32  ;;  %2499 = vmatprep.subr.bf16.mxu1 %v3630_v33 }
 0x2d8   :  { %2581 = vmatprep.subr.bf16.mxu0 %v3632_v34 }
 0x2da   :  { %2500 = vmatpush1.bf16.msra.mxu1 %v3629_v41 }
 0x2db   :  { %2582 = vmatpush1.bf16.msra.mxu0 %v3631_v43  ;;  %2501 = vmatprep.subr.bf16.mxu1 %v3638_v44 }
 0x2dc   :  { %2583 = vmatprep.subr.bf16.mxu0 %v3640_v46 }
 0x2de   :  { %2502 = vmatpush1.bf16.msra.mxu1 %v3637_v47  ;;  %v3969_v47 = vld [vmem:[#allocation10 + $0x100] sm:$0xff]  }
 0x2df   :  { %2584 = vmatpush1.bf16.msra.mxu0 %v3639_v48  ;;  %3706 = vmatprep.subr.bf16.mxu1 %v3935_v49  ;;  %v3970_v48 = vld [vmem:[#allocation10 + $0x180] sm:$0xff]  }
 0x2e0   :  { %3728 = vmatprep.subr.bf16.mxu0 %v3936_v50 }
 0x2e1   :  { %2504 = vmatmul.mubr.bf16.vlgmr.msra.gmra.mrb[8].mxu1 %v4318_v27 }
 0x2e2   :  { %2586 = vmatmul.mubr.bf16.vlgmr.msra.gmra.mrb[12].mxu0 %v4318_v27  ;;  %3707 = vmatpush3.bf16.msra.mxu1 %v3937_v51  ;;  %v3950_v27 = vld [vmem:[#allocation10 + $0x98] sm:$0xff]   ;;  %v3971_v51 = vld [vmem:[#allocation10 + $0x148] sm:$0xff]  }
 0x2e3   :  { %3729 = vmatpush3.bf16.msra.mxu0 %v3938_v52  ;;  %3708 = vmatprep.subr.bf16.mxu1 %v3939_v1  ;;  %v3972_v52 = vld [vmem:[#allocation10 + $0x1c8] sm:$0xff]  }
 0x2e4   :  { %3730 = vmatprep.subr.bf16.mxu0 %v3940_v53  ;;  %v3973_v1 = vld [vmem:[#allocation10 + $0x108] sm:$0xff]  }
 0x2e5   :  { %v3974_v53 = vld [vmem:[#allocation10 + $0x188] sm:$0xff]  }
 0x2e6   :  { %3709 = vmatpush3.bf16.msra.mxu1 %v3941_v54  ;;  %v3975_v54 = vld [vmem:[#allocation10 + $0x150] sm:$0xff]  }
 0x2e7   :  { %3731 = vmatpush3.bf16.msra.mxu0 %v3942_v55  ;;  %3710 = vmatprep.subr.bf16.mxu1 %v3943_v56  ;;  %v3976_v55 = vld [vmem:[#allocation10 + $0x1d0] sm:$0xff]  }
 0x2e8   :  { %3732 = vmatprep.subr.bf16.mxu0 %v3944_v57  ;;  %v3977_v56 = vld [vmem:[#allocation10 + $0x110] sm:$0xff]  }
 0x2e9   :  { %v3978_v57 = vld [vmem:[#allocation10 + $0x190] sm:$0xff]  }
 0x2ea   :  { %3711 = vmatpush3.bf16.msra.mxu1 %v3945_v58  ;;  %v3979_v58 = vld [vmem:[#allocation10 + $0x158] sm:$0xff]  }
 0x2eb   :  { %3733 = vmatpush3.bf16.msra.mxu0 %v3946_v59  ;;  %3712 = vmatprep.subr.bf16.mxu1 %v3947_v60  ;;  %v3980_v59 = vld [vmem:[#allocation10 + $0x1d8] sm:$0xff]  }
 0x2ec   :  { %3734 = vmatprep.subr.bf16.mxu0 %v3948_v61  ;;  %v3981_v60 = vld [vmem:[#allocation10 + $0x118] sm:$0xff]  }
 0x2ed   :  { %v3982_v61 = vld [vmem:[#allocation10 + $0x198] sm:$0xff]  }
 0x2ee   :  { %3713 = vmatpush3.bf16.msra.mxu1 %v3949_v62  ;;  %v3983_v62 = vld [vmem:[#allocation10 + $0x160] sm:$0xff]  }
 0x2ef   :  { %3735 = vmatpush3.bf16.msra.mxu0 %v3950_v27  ;;  %3714 = vmatprep.subr.bf16.mxu1 %v3951_v2  ;;  %v3984_v27 = vld [vmem:[#allocation10 + $0x1e0] sm:$0xff]  }
 0x2f0   :  { %3736 = vmatprep.subr.bf16.mxu0 %v3952_v63  ;;  %v3985_v2 = vld [vmem:[#allocation10 + $0x120] sm:$0xff]  }
 0x2f1   :  { %v3986_v63 = vld [vmem:[#allocation10 + $0x1a0] sm:$0xff]  }
 0x2f2   :  { %3715 = vmatpush3.bf16.msra.mxu1 %v3953_v0  ;;  %v3987_v0 = vld [vmem:[#allocation10 + $0x168] sm:$0xff]  }
 0x2f3   :  { %3737 = vmatpush3.bf16.msra.mxu0 %v3954_v39  ;;  %3716 = vmatprep.subr.bf16.mxu1 %v3955_v3  ;;  %v3988_v39 = vld [vmem:[#allocation10 + $0x1e8] sm:$0xff]  }
 0x2f4   :  { %3738 = vmatprep.subr.bf16.mxu0 %v3956_v4  ;;  %v3989_v3 = vld [vmem:[#allocation10 + $0x128] sm:$0xff]  }
 0x2f5   :  { %v3990_v4 = vld [vmem:[#allocation10 + $0x1a8] sm:$0xff]  }
 0x2f6   :  { %3717 = vmatpush3.bf16.msra.mxu1 %v3957_v5  ;;  %v3991_v5 = vld [vmem:[#allocation10 + $0x170] sm:$0xff]  }
 0x2f7   :  { %3739 = vmatpush3.bf16.msra.mxu0 %v3958_v9  ;;  %3718 = vmatprep.subr.bf16.mxu1 %v3959_v6  ;;  %v3992_v9 = vld [vmem:[#allocation10 + $0x1f0] sm:$0xff]  }
 0x2f8   :  { %3740 = vmatprep.subr.bf16.mxu0 %v3960_v7  ;;  %v3993_v6 = vld [vmem:[#allocation10 + $0x130] sm:$0xff]  }
 0x2f9   :  { %v3994_v7 = vld [vmem:[#allocation10 + $0x1b0] sm:$0xff]  }
 0x2fa   :  { %3719 = vmatpush3.bf16.msra.mxu1 %v3961_v8  ;;  %v3995_v8 = vld [vmem:[#allocation10 + $0x178] sm:$0xff]  }
 0x2fb   :  { %3741 = vmatpush3.bf16.msra.mxu0 %v3962_v10  ;;  %3720 = vmatprep.subr.bf16.mxu1 %v3963_v11  ;;  %v3996_v10 = vld [vmem:[#allocation10 + $0x1f8] sm:$0xff]  }
 0x2fc   :  { %3742 = vmatprep.subr.bf16.mxu0 %v3964_v12  ;;  %v3997_v11 = vld [vmem:[#allocation10 + $0x138] sm:$0xff]  }
 0x2fd   :  { %v3998_v12 = vld [vmem:[#allocation10 + $0x1b8] sm:$0xff]  }
 0x2fe   :  { %3721 = vmatpush3.bf16.msra.mxu1 %v3965_v45  ;;  %v964_v45 = vsub.s32 4, %v4273_v15 }
 0x2ff   :  { %3743 = vmatpush3.bf16.msra.mxu0 %v3966_v13  ;;  %3750 = vmatprep.subr.bf16.mxu1 %v3967_v14  ;;  %v972_v13 = vsub.s32 6, %v4273_v15  ;;  %v968_v14 = vsub.s32 5, %v4273_v15 }
 0x300   :  { %3772 = vmatprep.subr.bf16.mxu0 %v3968_v17  ;;  %v976_v17 = vsub.s32 7, %v4273_v15 }
 0x334   :  { %v2341_v24 = vpop.f32.mrb[4].mxu1  ;;  %v2423_v25 = vpop.f32.mrb[8].mxu0 }
 0x335   :  { %v3794_v26 = vadd.f32 %v2341_v24, %v949_v20  ;;  %v3796_v28 = vadd.f32 %v2423_v25, %v957_v21  ;;  %v2343_v29 = vpop.f32.mrb[5].mxu1  ;;  %v2425_v30 = vpop.f32.mrb[9].mxu0  ;;  %v965_v20 = vrot.slane %v4333_v19, %v964_v45  ;;  %v973_v21 = vrot.slane %v4333_v19, %v972_v13 }
 0x336   :  { %v3795_v31 = vadd.f32 %v2343_v29, %v953_v22  ;;  %v3797_v32 = vadd.f32 %v2425_v30, %v961_v23  ;;  %v2345_v16 = vpop.f32.mrb[6].mxu1  ;;  %v2427_v33 = vpop.f32.mrb[10].mxu0  ;;  %v969_v22 = vrot.slane %v4333_v19, %v968_v14  ;;  %v977_v23 = vrot.slane %v4333_v19, %v976_v17 }
 0x337   :  { %v2594_v34 = vmul.f32 0.2, %v3794_v26  ;;  %v2596_v35 = vmul.f32 0.2, %v3796_v28  ;;  %v2346_v42 = vpop.f32.mrb[7].mxu1  ;;  %v2428_v36 = vpop.f32.mrb[11].mxu0 }
 0x338   :  { %v2595_v37 = vmul.f32 0.2, %v3795_v31  ;;  %v2597_v18 = vmul.f32 0.2, %v3797_v32 }
 0x339   :  { %v2602_v38 = vmax.f32 %v3794_v26, %v2594_v34  ;;  %v2604_v41 = vmax.f32 %v3796_v28, %v2596_v35 }
 0x33a   :  { %v2603_v43 = vmax.f32 %v3795_v31, %v2595_v37  ;;  %v2605_v40 = vmax.f32 %v3797_v32, %v2597_v18 }
 0x33b   :  { %v2610_v49 = vpack.c.bf16 %v2602_v38, %v2602_v38  ;;  %v2612_v50 = vpack.c.bf16 %v2604_v41, %v2604_v41 }
 0x33c   :  { %v2611_v44 = vpack.c.bf16 %v2603_v43, %v2603_v43  ;;  %v2613_v46 = vpack.c.bf16 %v2605_v40, %v2605_v40 }
 0x33e   :  { %3169 = vmatprep.mubr.bf16.mxu1 %v2611_v44  ;;  %3209 = vmatprep.mubr.bf16.mxu0 %v2613_v46 }
 0x33f   :  { %3170 = vmatmul.mubr.bf16.vlgmr.msra.gmra.mrb[12].mxu1 %v2610_v49  ;;  %3210 = vmatmul.mubr.bf16.vlgmr.msra.gmra.mrb[16].mxu0 %v2612_v50  ;;  %v3641_v49 = vld [vmem:[%s4376_s8] ss:$0 sm:$0xff]  ;;  %s4155_s8 = smov [#allocation11]  }
 0x340   :  { %3751 = vmatpush3.bf16.msra.mxu1 %v3969_v47  ;;  %3773 = vmatpush3.bf16.msra.mxu0 %v3970_v48  ;;  %s3305_s1 = sshll.u32 %s4155_s8, 4  ;;  %s3306_s1 = int_to_ptr.vmem [resolvable:$true] %s3305_s1 }
 0x341   :  { %3752 = vmatprep.subr.bf16.mxu1 %v3971_v51  ;;  %3774 = vmatprep.subr.bf16.mxu0 %v3972_v52  ;;  %s4111_s10 = scalar_lea.vmem %s3306_s1, 128  ;;  %p4116_p13 = scmp.lt.s32.totalorder %s3306_s1, %s3306_s1 }
 0x342   :  { %p4112_p12 = scmp.ne.s32.totalorder %s3306_s1, %s4111_s10  ;;  %p4117_p0 = scmp.lt.s32.totalorder %s4111_s10, %s4111_s10 }
 0x344   :  { %3753 = vmatpush3.bf16.msra.mxu1 %v3973_v1  ;;  %3775 = vmatpush3.bf16.msra.mxu0 %v3974_v53  ;;  %p4118_p1 = por %p4117_p0, %p4116_p13 }
 0x345   :  { %3754 = vmatprep.subr.bf16.mxu1 %v3975_v54  ;;  %3776 = vmatprep.subr.bf16.mxu0 %v3976_v55 }
 0x346   :  { %p4119_p2 = pnand %p4118_p1, %p4112_p12 }
 0x348   :  { %3755 = vmatpush3.bf16.msra.mxu1 %v3977_v56  ;;  %3777 = vmatpush3.bf16.msra.mxu0 %v3978_v57 }
 0x349   :  { %3756 = vmatprep.subr.bf16.mxu1 %v3979_v58  ;;  %3778 = vmatprep.subr.bf16.mxu0 %v3980_v59 }
 0x34c   :  { %3757 = vmatpush3.bf16.msra.mxu1 %v3981_v60  ;;  %3779 = vmatpush3.bf16.msra.mxu0 %v3982_v61 }
 0x34d   :  { %3758 = vmatprep.subr.bf16.mxu1 %v3983_v62  ;;  %3780 = vmatprep.subr.bf16.mxu0 %v3984_v27 }
 0x350   :  { %3759 = vmatpush3.bf16.msra.mxu1 %v3985_v2  ;;  %3781 = vmatpush3.bf16.msra.mxu0 %v3986_v63 }
 0x351   :  { %3760 = vmatprep.subr.bf16.mxu1 %v3987_v0  ;;  %3782 = vmatprep.subr.bf16.mxu0 %v3988_v39 }
 0x354   :  { %3761 = vmatpush3.bf16.msra.mxu1 %v3989_v3  ;;  %3783 = vmatpush3.bf16.msra.mxu0 %v3990_v4 }
 0x355   :  { %3762 = vmatprep.subr.bf16.mxu1 %v3991_v5  ;;  %3784 = vmatprep.subr.bf16.mxu0 %v3992_v9 }
 0x358   :  { %3763 = vmatpush3.bf16.msra.mxu1 %v3993_v6  ;;  %3785 = vmatpush3.bf16.msra.mxu0 %v3994_v7 }
 0x359   :  { %3764 = vmatprep.subr.bf16.mxu1 %v3995_v8  ;;  %3786 = vmatprep.subr.bf16.mxu0 %v3996_v10 }
 0x35c   :  { %3765 = vmatpush3.bf16.msra.mxu1 %v3997_v11  ;;  %3787 = vmatpush3.bf16.msra.mxu0 %v3998_v12 }
 0x3b4   :  { %v2505_v24 = vpop.f32.mrb[8].mxu1 }
 0x3b5   :  { %v3798_v25 = vadd.f32 %v2505_v24, %v965_v20  ;;  %v2587_v26 = vpop.f32.mrb[12].mxu0  ;;  %v2507_v28 = vpop.f32.mrb[9].mxu1 }
 0x3b6   :  { %v3800_v29 = vadd.f32 %v2587_v26, %v973_v21  ;;  %v3799_v30 = vadd.f32 %v2507_v28, %v969_v22  ;;  %v2589_v31 = vpop.f32.mrb[13].mxu0  ;;  %v2509_v32 = vpop.f32.mrb[10].mxu1 }
 0x3b7   :  { %v2598_v16 = vmul.f32 0.2, %v3798_v25  ;;  %v3801_v33 = vadd.f32 %v2589_v31, %v977_v23  ;;  %v2591_v34 = vpop.f32.mrb[14].mxu0  ;;  %v2510_v15 = vpop.f32.mrb[11].mxu1 }
 0x3b8   :  { %v2600_v35 = vmul.f32 0.2, %v3800_v29  ;;  %v2599_v42 = vmul.f32 0.2, %v3799_v30  ;;  %v2592_v36 = vpop.f32.mrb[15].mxu0 }
 0x3b9   :  { %v2606_v37 = vmax.f32 %v3798_v25, %v2598_v16  ;;  %v2601_v18 = vmul.f32 0.2, %v3801_v33 }
 0x3ba   :  { %v2608_v38 = vmax.f32 %v3800_v29, %v2600_v35  ;;  %v2607_v41 = vmax.f32 %v3799_v30, %v2599_v42 }
 0x3bb   :  { %v2609_v19 = vmax.f32 %v3801_v33, %v2601_v18  ;;  %v2614_v40 = vpack.c.bf16 %v2606_v37, %v2606_v37 }
 0x3bc   :  { %v2615_v43 = vpack.c.bf16 %v2607_v41, %v2607_v41  ;;  %v2616_v46 = vpack.c.bf16 %v2608_v38, %v2608_v38 }
 0x3bd   :  { %v2617_v44 = vpack.c.bf16 %v2609_v19, %v2609_v19 }
 0x3be   :  { %3249 = vmatprep.mubr.bf16.mxu1 %v2615_v43 }
 0x3bf   :  { %3289 = vmatprep.mubr.bf16.mxu0 %v2617_v44  ;;  %3250 = vmatmul.mubr.bf16.vlgmr.msra.gmra.mrb[16].mxu1 %v2614_v40 }
 0x3c0   :  { %3290 = vmatmul.mubr.bf16.vlgmr.msra.gmra.mrb[20].mxu0 %v2616_v46 }
 0x412   :  { %v3722_v47 = vpop.f32.mrb[12].mxu1  ;;  %v3744_v48 = vpop.f32.mrb[16].mxu0 }
 0x413   :  { %v3723_v50 = vpop.f32.mrb[13].mxu1  ;;  %v3745_v51 = vpop.f32.mrb[17].mxu0 }
 0x414   :  { %v3724_v52 = vadd.f32 %v3723_v50, %v3722_v47  ;;  %v3746_v1 = vadd.f32 %v3745_v51, %v3744_v48  ;;  %v3725_v53 = vpop.f32.mrb[14].mxu1  ;;  %v3747_v54 = vpop.f32.mrb[18].mxu0 }
 0x415   :  { %v3726_v55 = vpop.f32.mrb[15].mxu1  ;;  %v3748_v56 = vpop.f32.mrb[19].mxu0 }
 0x416   :  { %v3172_v57 = vadd.f32 %v3724_v52, %v3641_v49 }
 0x418   :  { %v3212_v58 = vadd.f32 %v3746_v1, %v3172_v57 }
 0x492   :  { %v3766_v59 = vpop.f32.mrb[16].mxu1 }
 0x493   :  { %v3788_v60 = vpop.f32.mrb[20].mxu0  ;;  %v3767_v61 = vpop.f32.mrb[17].mxu1 }
 0x494   :  { %v3768_v62 = vadd.f32 %v3767_v61, %v3766_v59  ;;  %v3789_v27 = vpop.f32.mrb[21].mxu0  ;;  %v3769_v2 = vpop.f32.mrb[18].mxu1 }
 0x495   :  { %v3790_v63 = vadd.f32 %v3789_v27, %v3788_v60  ;;  %v3791_v0 = vpop.f32.mrb[22].mxu0  ;;  %v3770_v39 = vpop.f32.mrb[19].mxu1 }
 0x496   :  { %v3252_v3 = vadd.f32 %v3768_v62, %v3212_v58  ;;  %v3792_v4 = vpop.f32.mrb[23].mxu0 }
 0x498   :  { %v3292_v5 = vadd.f32 %v3790_v63, %v3252_v3 }
 0x49a   :  { %3999 = vtanh.f32 %v3292_v5 }
 0x4a4   :  { %v4000_v9 = vpop.eup %3999 }
 0x4a5   :  { %3298 = vst [vmem:[#allocation11] sm:$0xff] %v4000_v9 }
 0x4a6   :  { %4122 = shalt.err (!%p4119_p2)
}
 0x4a7   :  { %s4123_s14 = scalar_lea.hbm %s4377_s9, 128 }
 0x4a8   :  { %p4124_p3 = scmp.ne.s32.totalorder %s4377_s9, %s4123_s14  ;;  %p4127_p4 = scmp.lt.u32.totalorder %s4123_s14, %s4377_s9 }
 0x4aa   :  { %p4129_p5 = pnand %p4127_p4, %p4124_p3 }
 0x4ac   :  { %4132 = shalt.err (!%p4129_p5)
}
 0x4ad   :  { %3308 = dma.vmem_to_hbm [thread:$0]  %s3306_s1, 128, %s4377_s9, [#allocation4]  }
 0x4ae   :  { %4139 = dma.done.wait [#allocation4], 128  }
 0x4af   :  { %4140 = vsyncadd [#allocation4], 4294967168 }
 0x4b0   :  { %3312 = vsyncpa [#allocation3], 1 }
 0x4b1   :  { %3313 = vsyncpa [#allocation6], 1 }
 0x4b2   :  { %3314 = vsyncpa [#allocation9], 1 }
 0x4b3   :  { %3315 = vsyncpa [#allocation4], 1 }

</bundles_post_ra>
